<compile_context>
chip_gen: v7x
topology: tpu7x:2x2x1
jax: 0.10.0
libtpu: 0.0.40
codegen_flags: <defaults>
</compile_context>

<pallas_src>
import jax
import jax.numpy as jnp
import numpy as np
from jax import lax
from jax.experimental import pallas as pl
from jax.experimental.pallas import tpu as pltpu

DIM_INPUT = 128
DIM_HIDDEN = 128
NUM_LAYERS = 4


def policy_kernel(num_ref, narr_ref, query_ref, wn_ref, bn_ref, wq_ref, bq_ref, o_ref):
    """One grid step = one tile of Bt batch elements.

    num_ref   : VMEM int32 [Bt, 1]            (num_narratives per batch row)
    narr_ref  : VMEM [Bt, N, D]
    query_ref : VMEM [Bt, Q, D]
    w*_ref    : VMEM [L, D, H]                (pre-transposed Linear weights, shared)
    b*_ref    : VMEM [L, H]                   (f32 biases)
    o_ref     : VMEM [Bt, Q]                  (softmax probabilities)
    """
    Bt, N, D = narr_ref.shape
    _, Q, _ = query_ref.shape
    L, _, H = wn_ref.shape

    # Hoist bias loads out of the (unrolled) layer loop.
    bn = bn_ref[...]          # [L, H] f32
    bq = bq_ref[...]          # [L, H] f32

    def mlp(x2d, w_ref, b):
        # x2d: [M, D].  Weights may be bf16 (v6e/v7x fast path); accumulate in f32.
        h = x2d
        for l in range(L):
            wl = w_ref[l]                                    # [D, H], static-index load
            h = jnp.dot(h.astype(wl.dtype), wl,
                        preferred_element_type=jnp.float32) + b[l:l + 1, :]
            if l < L - 1:                                    # ReLU on all but the final layer
                h = jnp.maximum(h, 0.0)
        return h                                             # [M, H] f32

    # Run each encoder once per tile on a flattened (Bt*rows, D) slab -> big MXU M dim.
    narr_enc = mlp(narr_ref[...].reshape(Bt * N, D), wn_ref, bn).reshape(Bt, N, H)
    query_enc = mlp(query_ref[...].reshape(Bt * Q, D), wq_ref, bq).reshape(Bt, Q, H)

    # Padding mask over narratives: row n of batch b is valid iff n < num_narratives[b].
    num = num_ref[...]                                                  # [Bt, 1] int32
    valid = lax.broadcasted_iota(jnp.int32, (Bt, N), 1) < num           # [Bt, N]
    mask = valid.astype(jnp.float32)[:, :, None]                        # [Bt, N, 1]

    # Masked mean over narratives -> [Bt, H]
    agg = jnp.sum(narr_enc * mask, axis=1) / num.astype(jnp.float32)

    # agg . query_enc over H, kept off the MXU (VPU multiply + lane reduce) -> [Bt, Q]
    logits = jnp.sum(agg[:, None, :] * query_enc, axis=-1)

    # Softmax over the query dim (f32 throughout).
    m = jnp.max(logits, axis=-1, keepdims=True)
    e = jnp.exp(logits - m)
    o_ref[...] = e / jnp.sum(e, axis=-1, keepdims=True)                 # [Bt, Q] slab store


def coordinatewise_mlp_policy(narr, query, num_narratives, wn, bn, wq, bq,
                              *, block_b=32, matmul_dtype=jnp.float32):
    """narr [B,N,D], query [B,Q,D], num_narratives [B]; weights [L,D,H], biases [L,H]."""
    B, N, D = narr.shape
    _, Q, _ = query.shape
    L, _, H = wn.shape

    # Batch-tile size: sublane-aligned (multiple of 8) whenever we actually tile.
    Bt = min(block_b, B)
    if Bt < B:
        Bt = max(8, (Bt // 8) * 8)
    B_pad = pl.cdiv(B, Bt) * Bt

    # Optional bf16 MXU operands (v6e/v7x): halves input DMA bytes, f32 accumulation in-kernel.
    if matmul_dtype != jnp.float32:
        narr = narr.astype(matmul_dtype)
        query = query.astype(matmul_dtype)
        wn = wn.astype(matmul_dtype)
        wq = wq.astype(matmul_dtype)

    if B_pad != B:
        pad = B_pad - B
        narr = jnp.pad(narr, ((0, pad), (0, 0), (0, 0)))
        query = jnp.pad(query, ((0, pad), (0, 0), (0, 0)))
        # Pad counts with 1 so padded rows stay finite (they are sliced off below).
        num_narratives = jnp.pad(num_narratives, ((0, pad),), constant_values=1)

    num2d = num_narratives.astype(jnp.int32).reshape(B_pad, 1)

    # TODO(synk): at larger H (>= ~512) set pipeline_mode=pl.Buffered(1) on the two weight
    # BlockSpecs (constant index_map) to avoid pointless double-buffering of weights in VMEM.
    out = pl.pallas_call(
        policy_kernel,
        out_shape=jax.ShapeDtypeStruct((B_pad, Q), jnp.float32),
        grid=(B_pad // Bt,),
        in_specs=[
            pl.BlockSpec((Bt, 1), lambda b: (b, 0)),
            pl.BlockSpec((Bt, N, D), lambda b: (b, 0, 0)),
            pl.BlockSpec((Bt, Q, D), lambda b: (b, 0, 0)),
            pl.BlockSpec((L, D, H), lambda b: (0, 0, 0)),
            pl.BlockSpec((L, H), lambda b: (0, 0)),
            pl.BlockSpec((L, D, H), lambda b: (0, 0, 0)),
            pl.BlockSpec((L, H), lambda b: (0, 0)),
        ],
        out_specs=pl.BlockSpec((Bt, Q), lambda b: (b, 0)),
        compiler_params=pltpu.CompilerParams(dimension_semantics=("parallel",)),
    )(num2d, narr, query, wn, bn, wq, bq)

    return out[:B]


def reference(narr, query, num_narratives, wn, bn, wq, bq):
    """Pure-JAX reference mirroring the PyTorch forward (full f32 precision)."""
    def mlp(x, w, b):
        h = x
        for l in range(NUM_LAYERS):
            h = jnp.dot(h, w[l], precision="highest") + b[l]
            if l < NUM_LAYERS - 1:
                h = jnp.maximum(h, 0.0)
        return h

    ne = mlp(narr, wn, bn)
    qe = mlp(query, wq, bq)
    N = narr.shape[1]
    mask = (jnp.arange(N)[None, :] < num_narratives[:, None]).astype(jnp.float32)[..., None]
    agg = (ne * mask).sum(1) / num_narratives[:, None].astype(jnp.float32)
    logits = jnp.einsum("bh,bqh->bq", agg, qe, precision="highest")
    return jax.nn.softmax(logits, axis=-1)


if __name__ == "__main__":
    B, N, Q = 16, 8, 8
    D, H = DIM_INPUT, DIM_HIDDEN

    key = jax.random.PRNGKey(0)
    k = jax.random.split(key, 7)
    narr = jax.random.normal(k[0], (B, N, D), jnp.float32)
    query = jax.random.normal(k[1], (B, Q, D), jnp.float32)
    num_narratives = jax.random.randint(k[2], (B,), 1, N + 1).astype(jnp.int32)

    # Deterministic synthetic parameters (Linear weights pre-transposed to [in, out]).
    wn = 0.05 * jax.random.normal(k[3], (NUM_LAYERS, D, H), jnp.float32)
    bn = 0.05 * jax.random.normal(k[4], (NUM_LAYERS, H), jnp.float32)
    wq = 0.05 * jax.random.normal(k[5], (NUM_LAYERS, D, H), jnp.float32)
    bq = 0.05 * jax.random.normal(k[6], (NUM_LAYERS, H), jnp.float32)

    ref = reference(narr, query, num_narratives, wn, bn, wq, bq)

    # f32 path (exact semantics of the PyTorch module), block_b=8 -> 2 grid steps.
    out = jax.block_until_ready(
        coordinatewise_mlp_policy(narr, query, num_narratives, wn, bn, wq, bq, block_b=8)
    )
    assert out.shape == (B, Q), out.shape
    assert np.allclose(np.asarray(out), np.asarray(ref), atol=3e-5, rtol=3e-5)
    assert np.allclose(np.asarray(out).sum(-1), 1.0, atol=1e-5)

    # bf16-MXU path (v6e/v7x fast option): f32 accumulation, looser tolerance.
    out_bf16 = jax.block_until_ready(
        coordinatewise_mlp_policy(narr, query, num_narratives, wn, bn, wq, bq,
                                  block_b=8, matmul_dtype=jnp.bfloat16)
    )
    assert out_bf16.shape == (B, Q), out_bf16.shape
    assert np.allclose(np.asarray(out_bf16), np.asarray(ref), atol=2e-2, rtol=2e-2)
    assert np.allclose(np.asarray(out_bf16).sum(-1), 1.0, atol=1e-3)

    print("KERNEL_OK")
</pallas_src>

<mosaic_0001>
module attributes {stable_mosaic.version = 11 : i64} {
  func.func @policy_kernel(%arg0: i32, %arg1: memref<8x1xi32, #tpu.memory_space<vmem>>, %arg2: memref<8x8x128xf32, #tpu.memory_space<vmem>>, %arg3: memref<8x8x128xf32, #tpu.memory_space<vmem>>, %arg4: memref<4x128x128xf32, #tpu.memory_space<vmem>>, %arg5: memref<4x128xf32, #tpu.memory_space<vmem>>, %arg6: memref<4x128x128xf32, #tpu.memory_space<vmem>>, %arg7: memref<4x128xf32, #tpu.memory_space<vmem>>, %arg8: memref<8x8xf32, #tpu.memory_space<vmem>>) attributes {dimension_semantics = [#tpu.dimension_semantics<parallel>], iteration_bounds = array<i64: 2>, scalar_prefetch = 0 : i64, scratch_operands = 0 : i64, tpu.core_type = #tpu.core_type<tc>, window_params = [{transform_indices = @transform_0, window_bounds = array<i64: 8, 1>}, {transform_indices = @transform_1, window_bounds = array<i64: 8, 8, 128>}, {transform_indices = @transform_2, window_bounds = array<i64: 8, 8, 128>}, {pipeline_mode = #tpu.pipeline_mode<synchronous>, transform_indices = @transform_3, window_bounds = array<i64: 4, 128, 128>}, {pipeline_mode = #tpu.pipeline_mode<synchronous>, transform_indices = @transform_4, window_bounds = array<i64: 4, 128>}, {pipeline_mode = #tpu.pipeline_mode<synchronous>, transform_indices = @transform_5, window_bounds = array<i64: 4, 128, 128>}, {pipeline_mode = #tpu.pipeline_mode<synchronous>, transform_indices = @transform_6, window_bounds = array<i64: 4, 128>}, {transform_indices = @transform_7, window_bounds = array<i64: 8, 8>}]} {
    %c0 = arith.constant 0 : index
    %c0_0 = arith.constant 0 : index
    %0 = vector.load %arg5[%c0, %c0_0] : memref<4x128xf32, #tpu.memory_space<vmem>>, vector<4x128xf32>
    %c0_1 = arith.constant 0 : index
    %c0_2 = arith.constant 0 : index
    %1 = vector.load %arg7[%c0_1, %c0_2] : memref<4x128xf32, #tpu.memory_space<vmem>>, vector<4x128xf32>
    %c0_3 = arith.constant 0 : index
    %c0_4 = arith.constant 0 : index
    %c0_5 = arith.constant 0 : index
    %2 = vector.load %arg2[%c0_3, %c0_4, %c0_5] : memref<8x8x128xf32, #tpu.memory_space<vmem>>, vector<8x8x128xf32>
    %3 = vector.shape_cast %2 : vector<8x8x128xf32> to vector<64x128xf32>
    %c0_6 = arith.constant 0 : index
    %c0_7 = arith.constant 0 : index
    %c0_8 = arith.constant 0 : index
    %4 = vector.load %arg4[%c0_6, %c0_7, %c0_8] : memref<4x128x128xf32, #tpu.memory_space<vmem>>, vector<1x128x128xf32>
    %5 = vector.shape_cast %4 : vector<1x128x128xf32> to vector<128x128xf32>
    %cst = arith.constant dense<0.000000e+00> : vector<64x128xf32>
    %6 = tpu.matmul %3, %5, %cst {dimension_numbers = #tpu.dot_dimension_numbers<[1], [0], [0], [1], [0, 0, 1, 1], [], []>} : vector<64x128xf32>, vector<128x128xf32>, vector<64x128xf32> -> vector<64x128xf32>
    %7 = vector.extract_strided_slice %0 {offsets = [0, 0], sizes = [1, 128], strides = [1, 1]} : vector<4x128xf32> to vector<1x128xf32>
    %8 = vector.broadcast %7 : vector<1x128xf32> to vector<64x128xf32>
    %9 = arith.addf %6, %8 : vector<64x128xf32>
    %cst_9 = arith.constant 0.000000e+00 : f32
    %10 = vector.broadcast %cst_9 : f32 to vector<64x128xf32>
    %11 = arith.maximumf %9, %10 : vector<64x128xf32>
    %c1 = arith.constant 1 : index
    %c0_10 = arith.constant 0 : index
    %c0_11 = arith.constant 0 : index
    %12 = vector.load %arg4[%c1, %c0_10, %c0_11] : memref<4x128x128xf32, #tpu.memory_space<vmem>>, vector<1x128x128xf32>
    %13 = vector.shape_cast %12 : vector<1x128x128xf32> to vector<128x128xf32>
    %cst_12 = arith.constant dense<0.000000e+00> : vector<64x128xf32>
    %14 = tpu.matmul %11, %13, %cst_12 {dimension_numbers = #tpu.dot_dimension_numbers<[1], [0], [0], [1], [0, 0, 1, 1], [], []>} : vector<64x128xf32>, vector<128x128xf32>, vector<64x128xf32> -> vector<64x128xf32>
    %15 = vector.extract_strided_slice %0 {offsets = [1, 0], sizes = [1, 128], strides = [1, 1]} : vector<4x128xf32> to vector<1x128xf32>
    %16 = vector.broadcast %15 : vector<1x128xf32> to vector<64x128xf32>
    %17 = arith.addf %14, %16 : vector<64x128xf32>
    %cst_13 = arith.constant 0.000000e+00 : f32
    %18 = vector.broadcast %cst_13 : f32 to vector<64x128xf32>
    %19 = arith.maximumf %17, %18 : vector<64x128xf32>
    %c2 = arith.constant 2 : index
    %c0_14 = arith.constant 0 : index
    %c0_15 = arith.constant 0 : index
    %20 = vector.load %arg4[%c2, %c0_14, %c0_15] : memref<4x128x128xf32, #tpu.memory_space<vmem>>, vector<1x128x128xf32>
    %21 = vector.shape_cast %20 : vector<1x128x128xf32> to vector<128x128xf32>
    %cst_16 = arith.constant dense<0.000000e+00> : vector<64x128xf32>
    %22 = tpu.matmul %19, %21, %cst_16 {dimension_numbers = #tpu.dot_dimension_numbers<[1], [0], [0], [1], [0, 0, 1, 1], [], []>} : vector<64x128xf32>, vector<128x128xf32>, vector<64x128xf32> -> vector<64x128xf32>
    %23 = vector.extract_strided_slice %0 {offsets = [2, 0], sizes = [1, 128], strides = [1, 1]} : vector<4x128xf32> to vector<1x128xf32>
    %24 = vector.broadcast %23 : vector<1x128xf32> to vector<64x128xf32>
    %25 = arith.addf %22, %24 : vector<64x128xf32>
    %cst_17 = arith.constant 0.000000e+00 : f32
    %26 = vector.broadcast %cst_17 : f32 to vector<64x128xf32>
    %27 = arith.maximumf %25, %26 : vector<64x128xf32>
    %c3 = arith.constant 3 : index
    %c0_18 = arith.constant 0 : index
    %c0_19 = arith.constant 0 : index
    %28 = vector.load %arg4[%c3, %c0_18, %c0_19] : memref<4x128x128xf32, #tpu.memory_space<vmem>>, vector<1x128x128xf32>
    %29 = vector.shape_cast %28 : vector<1x128x128xf32> to vector<128x128xf32>
    %cst_20 = arith.constant dense<0.000000e+00> : vector<64x128xf32>
    %30 = tpu.matmul %27, %29, %cst_20 {dimension_numbers = #tpu.dot_dimension_numbers<[1], [0], [0], [1], [0, 0, 1, 1], [], []>} : vector<64x128xf32>, vector<128x128xf32>, vector<64x128xf32> -> vector<64x128xf32>
    %31 = vector.extract_strided_slice %0 {offsets = [3, 0], sizes = [1, 128], strides = [1, 1]} : vector<4x128xf32> to vector<1x128xf32>
    %32 = vector.broadcast %31 : vector<1x128xf32> to vector<64x128xf32>
    %33 = arith.addf %30, %32 : vector<64x128xf32>
    %34 = vector.shape_cast %33 : vector<64x128xf32> to vector<8x8x128xf32>
    %c0_21 = arith.constant 0 : index
    %c0_22 = arith.constant 0 : index
    %c0_23 = arith.constant 0 : index
    %35 = vector.load %arg3[%c0_21, %c0_22, %c0_23] : memref<8x8x128xf32, #tpu.memory_space<vmem>>, vector<8x8x128xf32>
    %36 = vector.shape_cast %35 : vector<8x8x128xf32> to vector<64x128xf32>
    %c0_24 = arith.constant 0 : index
    %c0_25 = arith.constant 0 : index
    %c0_26 = arith.constant 0 : index
    %37 = vector.load %arg6[%c0_24, %c0_25, %c0_26] : memref<4x128x128xf32, #tpu.memory_space<vmem>>, vector<1x128x128xf32>
    %38 = vector.shape_cast %37 : vector<1x128x128xf32> to vector<128x128xf32>
    %cst_27 = arith.constant dense<0.000000e+00> : vector<64x128xf32>
    %39 = tpu.matmul %36, %38, %cst_27 {dimension_numbers = #tpu.dot_dimension_numbers<[1], [0], [0], [1], [0, 0, 1, 1], [], []>} : vector<64x128xf32>, vector<128x128xf32>, vector<64x128xf32> -> vector<64x128xf32>
    %40 = vector.extract_strided_slice %1 {offsets = [0, 0], sizes = [1, 128], strides = [1, 1]} : vector<4x128xf32> to vector<1x128xf32>
    %41 = vector.broadcast %40 : vector<1x128xf32> to vector<64x128xf32>
    %42 = arith.addf %39, %41 : vector<64x128xf32>
    %cst_28 = arith.constant 0.000000e+00 : f32
    %43 = vector.broadcast %cst_28 : f32 to vector<64x128xf32>
    %44 = arith.maximumf %42, %43 : vector<64x128xf32>
    %c1_29 = arith.constant 1 : index
    %c0_30 = arith.constant 0 : index
    %c0_31 = arith.constant 0 : index
    %45 = vector.load %arg6[%c1_29, %c0_30, %c0_31] : memref<4x128x128xf32, #tpu.memory_space<vmem>>, vector<1x128x128xf32>
    %46 = vector.shape_cast %45 : vector<1x128x128xf32> to vector<128x128xf32>
    %cst_32 = arith.constant dense<0.000000e+00> : vector<64x128xf32>
    %47 = tpu.matmul %44, %46, %cst_32 {dimension_numbers = #tpu.dot_dimension_numbers<[1], [0], [0], [1], [0, 0, 1, 1], [], []>} : vector<64x128xf32>, vector<128x128xf32>, vector<64x128xf32> -> vector<64x128xf32>
    %48 = vector.extract_strided_slice %1 {offsets = [1, 0], sizes = [1, 128], strides = [1, 1]} : vector<4x128xf32> to vector<1x128xf32>
    %49 = vector.broadcast %48 : vector<1x128xf32> to vector<64x128xf32>
    %50 = arith.addf %47, %49 : vector<64x128xf32>
    %cst_33 = arith.constant 0.000000e+00 : f32
    %51 = vector.broadcast %cst_33 : f32 to vector<64x128xf32>
    %52 = arith.maximumf %50, %51 : vector<64x128xf32>
    %c2_34 = arith.constant 2 : index
    %c0_35 = arith.constant 0 : index
    %c0_36 = arith.constant 0 : index
    %53 = vector.load %arg6[%c2_34, %c0_35, %c0_36] : memref<4x128x128xf32, #tpu.memory_space<vmem>>, vector<1x128x128xf32>
    %54 = vector.shape_cast %53 : vector<1x128x128xf32> to vector<128x128xf32>
    %cst_37 = arith.constant dense<0.000000e+00> : vector<64x128xf32>
    %55 = tpu.matmul %52, %54, %cst_37 {dimension_numbers = #tpu.dot_dimension_numbers<[1], [0], [0], [1], [0, 0, 1, 1], [], []>} : vector<64x128xf32>, vector<128x128xf32>, vector<64x128xf32> -> vector<64x128xf32>
    %56 = vector.extract_strided_slice %1 {offsets = [2, 0], sizes = [1, 128], strides = [1, 1]} : vector<4x128xf32> to vector<1x128xf32>
    %57 = vector.broadcast %56 : vector<1x128xf32> to vector<64x128xf32>
    %58 = arith.addf %55, %57 : vector<64x128xf32>
    %cst_38 = arith.constant 0.000000e+00 : f32
    %59 = vector.broadcast %cst_38 : f32 to vector<64x128xf32>
    %60 = arith.maximumf %58, %59 : vector<64x128xf32>
    %c3_39 = arith.constant 3 : index
    %c0_40 = arith.constant 0 : index
    %c0_41 = arith.constant 0 : index
    %61 = vector.load %arg6[%c3_39, %c0_40, %c0_41] : memref<4x128x128xf32, #tpu.memory_space<vmem>>, vector<1x128x128xf32>
    %62 = vector.shape_cast %61 : vector<1x128x128xf32> to vector<128x128xf32>
    %cst_42 = arith.constant dense<0.000000e+00> : vector<64x128xf32>
    %63 = tpu.matmul %60, %62, %cst_42 {dimension_numbers = #tpu.dot_dimension_numbers<[1], [0], [0], [1], [0, 0, 1, 1], [], []>} : vector<64x128xf32>, vector<128x128xf32>, vector<64x128xf32> -> vector<64x128xf32>
    %64 = vector.extract_strided_slice %1 {offsets = [3, 0], sizes = [1, 128], strides = [1, 1]} : vector<4x128xf32> to vector<1x128xf32>
    %65 = vector.broadcast %64 : vector<1x128xf32> to vector<64x128xf32>
    %66 = arith.addf %63, %65 : vector<64x128xf32>
    %67 = vector.shape_cast %66 : vector<64x128xf32> to vector<8x8x128xf32>
    %c0_43 = arith.constant 0 : index
    %c0_44 = arith.constant 0 : index
    %68 = vector.load %arg1[%c0_43, %c0_44] : memref<8x1xi32, #tpu.memory_space<vmem>>, vector<8x1xi32>
    %69 = tpu.iota {dimensions = array<i32: 1>} : vector<8x8xi32>
    %70 = vector.broadcast %68 : vector<8x1xi32> to vector<8x8xi32>
    %71 = arith.cmpi slt, %69, %70 : vector<8x8xi32>
    %72 = arith.extui %71 : vector<8x8xi1> to vector<8x8xi32>
    %73 = arith.sitofp %72 : vector<8x8xi32> to vector<8x8xf32>
    %74 = vector.shape_cast %73 : vector<8x8xf32> to vector<8x8x1xf32>
    %75 = vector.broadcast %74 : vector<8x8x1xf32> to vector<8x8x128xf32>
    %76 = arith.mulf %34, %75 : vector<8x8x128xf32>
    %cst_45 = arith.constant dense<0.000000e+00> : vector<8x128xf32>
    %77 = vector.multi_reduction <add>, %76, %cst_45 [1] : vector<8x8x128xf32> to vector<8x128xf32>
    %78 = arith.sitofp %68 : vector<8x1xi32> to vector<8x1xf32>
    %79 = vector.broadcast %78 : vector<8x1xf32> to vector<8x128xf32>
    %80 = arith.divf %77, %79 : vector<8x128xf32>
    %81 = vector.shape_cast %80 : vector<8x128xf32> to vector<8x1x128xf32>
    %82 = vector.broadcast %81 : vector<8x1x128xf32> to vector<8x8x128xf32>
    %83 = arith.mulf %82, %67 : vector<8x8x128xf32>
    %cst_46 = arith.constant dense<0.000000e+00> : vector<8x8xf32>
    %84 = vector.multi_reduction <add>, %83, %cst_46 [2] : vector<8x8x128xf32> to vector<8x8xf32>
    %cst_47 = arith.constant dense<0xFF800000> : vector<8xf32>
    %85 = vector.multi_reduction <maximumf>, %84, %cst_47 [1] : vector<8x8xf32> to vector<8xf32>
    %86 = vector.shape_cast %85 : vector<8xf32> to vector<8x1xf32>
    %87 = vector.broadcast %86 : vector<8x1xf32> to vector<8x8xf32>
    %88 = arith.subf %84, %87 : vector<8x8xf32>
    %89 = math.exp %88 : vector<8x8xf32>
    %cst_48 = arith.constant dense<0.000000e+00> : vector<8xf32>
    %90 = vector.multi_reduction <add>, %89, %cst_48 [1] : vector<8x8xf32> to vector<8xf32>
    %91 = vector.shape_cast %90 : vector<8xf32> to vector<8x1xf32>
    %92 = vector.broadcast %91 : vector<8x1xf32> to vector<8x8xf32>
    %93 = arith.divf %89, %92 : vector<8x8xf32>
    %c0_49 = arith.constant 0 : index
    %c0_50 = arith.constant 0 : index
    %94 = vector.load %arg8[%c0_49, %c0_50] : memref<8x8xf32, #tpu.memory_space<vmem>>, vector<8x8xf32>
    tpu.vector_store %arg8[%c0_49, %c0_50], %93 {strides = array<i32>} : memref<8x8xf32, #tpu.memory_space<vmem>>, vector<8x8xf32>,
    return
  }
  func.func @transform_0(%arg0: i32) -> (i32, i32) {
    %c0_i32 = arith.constant 0 : i32
    %c0_i32_0 = arith.constant 0 : i32
    return %arg0, %c0_i32 : i32, i32
  }
  func.func @transform_1(%arg0: i32) -> (i32, i32, i32) {
    %c0_i32 = arith.constant 0 : i32
    %c0_i32_0 = arith.constant 0 : i32
    %c0_i32_1 = arith.constant 0 : i32
    return %arg0, %c0_i32, %c0_i32_0 : i32, i32, i32
  }
  func.func @transform_2(%arg0: i32) -> (i32, i32, i32) {
    %c0_i32 = arith.constant 0 : i32
    %c0_i32_0 = arith.constant 0 : i32
    %c0_i32_1 = arith.constant 0 : i32
    return %arg0, %c0_i32, %c0_i32_0 : i32, i32, i32
  }
  func.func @transform_3(%arg0: i32) -> (i32, i32, i32) {
    %c0_i32 = arith.constant 0 : i32
    %c0_i32_0 = arith.constant 0 : i32
    %c0_i32_1 = arith.constant 0 : i32
    %c0_i32_2 = arith.constant 0 : i32
    return %c0_i32, %c0_i32_0, %c0_i32_1 : i32, i32, i32
  }
  func.func @transform_4(%arg0: i32) -> (i32, i32) {
    %c0_i32 = arith.constant 0 : i32
    %c0_i32_0 = arith.constant 0 : i32
    %c0_i32_1 = arith.constant 0 : i32
    return %c0_i32, %c0_i32_0 : i32, i32
  }
  func.func @transform_5(%arg0: i32) -> (i32, i32, i32) {
    %c0_i32 = arith.constant 0 : i32
    %c0_i32_0 = arith.constant 0 : i32
    %c0_i32_1 = arith.constant 0 : i32
    %c0_i32_2 = arith.constant 0 : i32
    return %c0_i32, %c0_i32_0, %c0_i32_1 : i32, i32, i32
  }
  func.func @transform_6(%arg0: i32) -> (i32, i32) {
    %c0_i32 = arith.constant 0 : i32
    %c0_i32_0 = arith.constant 0 : i32
    %c0_i32_1 = arith.constant 0 : i32
    return %c0_i32, %c0_i32_0 : i32, i32
  }
  func.func @transform_7(%arg0: i32) -> (i32, i32) {
    %c0_i32 = arith.constant 0 : i32
    %c0_i32_0 = arith.constant 0 : i32
    return %arg0, %c0_i32 : i32, i32
  }
}

</mosaic_0001>

<bundles_post_ra>
// kernel: tpu_custom_call.1
= control target key start
LH: loop header
LB: loop body
LE: loop exit
PB: predicated region body
PF: predicated region fallthrough
CT: control target
= control target key end

     0   :  { %s3731_s0 = inlined_call_operand.vmem [shape: s32[16,1], index: 0, kind: input, shape index: {}]   ;;  %s3732_s1 = inlined_call_operand.hbm [shape: f32[16,8,128], index: 1, kind: input, shape index: {}]   ;;  %s3733_s2 = inlined_call_operand.hbm [shape: f32[16,8,128], index: 2, kind: input, shape index: {}]   ;;  %s3734_s3 = inlined_call_operand.hbm [shape: f32[4,128,128], index: 3, kind: input, shape index: {}]   ;;  %s3735_s4 = inlined_call_operand.vmem [shape: f32[4,128], index: 4, kind: input, shape index: {}]   ;;  %s3736_s5 = inlined_call_operand.hbm [shape: f32[4,128,128], index: 5, kind: input, shape index: {}]   ;;  %s3737_s6 = inlined_call_operand.vmem [shape: f32[4,128], index: 6, kind: input, shape index: {}]   ;;  %s3738_s7 = inlined_call_operand.vmem [shape: f32[16,8], index: 7, kind: output, shape index: {}]  }
   0x1   :  { %3746 = sst [smem:[#allocation13_spill]] %s3732_s1 }
   0x2   :  { %3747 = sst [smem:[#allocation14_spill]] %s3734_s3 }
   0x3   :  { %3748 = sst [smem:[#allocation15_spill]] %s3736_s5 }
   0x4   :  { %12 = vsyncpa [#allocation3], 0 }
   0x5   :  { %14 = vsyncpa [#allocation3 + $0x1], 0 }
   0x6   :  { %15 = vsyncpa [#allocation5], 0 }
   0x7   :  { %17 = vsyncpa [#allocation5 + $0x1], 0 }
   0x8   :  { %18 = vsyncpa [#allocation8], 0  ;;  %s3272_s24 = smov 0   ;;  %s3274_s25 = smov 0  }
   0x9   :  { %s3276_s26 = smov 0   ;;  %s3278_s27 = smov 0  }
   0xa LB: > { %s3291_s28 = sadd.s32 4294967295, %s3222_s27   ;;  %p70_p0 = scmp.ne.s32.totalorder %s3214_s25, %s3210_s24  ;;  %s3222_s27 = sphi %s3278_s27, %s3767_s27   ;;  %s3218_s26 = sphi %s3276_s26, %s3766_s26   ;;  %s3214_s25 = sphi %s3274_s25, %s3765_s25   ;;  %s3210_s24 = sphi %s3272_s24, %s3764_s24  }
   0xb   : > { %p3739_p1 = scmp.eq.s32.totalorder %s3291_s28, 0  ;;  %p2119_p2 = scmp.ge.s32.totalorder %s3222_s27, 1 }
   0xc   : > { %p217_p3 = scmp.lt.s32.totalorder %s3222_s27, 3  ;;  %s3224_s8 = smov [#allocation6]  }
   0xd   : > { %p3299_p4 = por %p3739_p1, %p70_p0  ;;  %s229_s9 = sshll.u32 %s3224_s8, 4  ;;  %s230_s9 = int_to_ptr.vmem [resolvable:$true] %s229_s9 }
   0xe   : > { %p3303_p5 = pnand %p2119_p2, %p217_p3  ;;  %s3225_s11 = smov [#allocation7]  }
   0xf   : > { %s3749_s29 = scalar_select %p3299_p4, 1, 0 }
  0x10   : > { %s3750_s30 = scalar_select %p3303_p5, 1, 0 }
  0x11   : > { %p2953_p6 = pneg %p3303_p5  ;;  %s245_s12 = sshll.u32 %s3225_s11, 4  ;;  %s3315_s12 = int_to_ptr.vmem [resolvable:$true] %s245_s12 }
  0x12   : > { %s3752_s3 = sld [smem:[#allocation14_spill]] }
  0x13   : > { %p3311_p7 = pnand %p2953_p6, %p3739_p1 }
  0x15   : > { %p3062_p9 = pneg %p3311_p7 }
  0x18   : > { %s3060_s15 = scalar_lea.hbm %s3752_s3, 8192 }
  0x19   : > { %p3061_p8 = scmp.ne.s32.totalorder %s3752_s3, %s3060_s15  ;;  %p3067_p12 = scmp.lt.u32.totalorder %s3060_s15, %s3752_s3 }
  0x1b   : > { %p3063_p10 = pnand %p3062_p9, %p3061_p8 }
  0x1d   : > { %p3064_p11 = pneg %p3063_p10 }
  0x1f   : > { %p3069_p13 = pnand %p3067_p12, %p3064_p11 }
  0x21   : > { %3072 = shalt.err (!%p3069_p13)
}
  0x22   : > { %s3073_s20 = scalar_lea.vmem %s230_s9, 8192  ;;  %p3081_p6 = scmp.lt.s32.totalorder %s230_s9, %s230_s9 }
  0x23   : > { %p3074_p0 = scmp.ne.s32.totalorder %s230_s9, %s3073_s20  ;;  %p3082_p1 = scmp.lt.s32.totalorder %s3073_s20, %s3073_s20 }
  0x25   : > { %p3076_p2 = pnand %p3074_p0, %p3062_p9  ;;  %p3083_p4 = por %p3082_p1, %p3081_p6 }
  0x27   : > { %p3077_p3 = pneg %p3076_p2 }
  0x29   : > { %p3084_p5 = pnand %p3083_p4, %p3077_p3 }
  0x2b   : > { %3087 = shalt.err (!%p3084_p5)
}
  0x2c   : > { %s3742_s21 = smov 128   ;;  %s3744_s22 = smov 8  }
  0x2d   : > { %2956 = dma.hbm_to_vmem [thread:$0]  (!%p3311_p7), %s3752_s3, 8192, %s230_s9, [#allocation5], %s3742_s21, %s3742_s21, %s3744_s22  }
  0x2e   : > { %s3753_s5 = sld [smem:[#allocation15_spill]] }
  0x34   : > { %s3088_s13 = scalar_lea.hbm %s3753_s5, 8192 }
  0x35   : > { %p3089_p1 = scmp.ne.s32.totalorder %s3753_s5, %s3088_s13  ;;  %p3095_p8 = scmp.lt.u32.totalorder %s3088_s13, %s3753_s5 }
  0x37   : > { %p3091_p4 = pnand %p3089_p1, %p3062_p9 }
  0x39   : > { %p3092_p5 = pneg %p3091_p4 }
  0x3b   : > { %p3097_p10 = pnand %p3095_p8, %p3092_p5 }
  0x3d   : > { %3100 = shalt.err (!%p3097_p10)
}
  0x3e   : > { %s3101_s9 = scalar_lea.vmem %s3315_s12, 8192  ;;  %p3109_p0 = scmp.lt.s32.totalorder %s3315_s12, %s3315_s12 }
  0x3f   : > { %p3102_p11 = scmp.ne.s32.totalorder %s3315_s12, %s3101_s9  ;;  %p3110_p2 = scmp.lt.s32.totalorder %s3101_s9, %s3101_s9 }
  0x41   : > { %p3104_p12 = pnand %p3102_p11, %p3062_p9  ;;  %p3111_p3 = por %p3110_p2, %p3109_p0 }
  0x43   : > { %p3105_p13 = pneg %p3104_p12 }
  0x45   : > { %p3112_p6 = pnand %p3111_p3, %p3105_p13 }
  0x47   : > { %3115 = shalt.err (!%p3112_p6)
}
  0x48   : > { %2959 = dma.hbm_to_vmem [thread:$0]  (!%p3311_p7), %s3753_s5, 8192, %s3315_s12, [#allocation8], %s3742_s21, %s3742_s21, %s3744_s22  }
  0x49   : > { %s3371_s20 = sadd.s32 1, %s3222_s27   ;;  %s57_s10 = sadd.s32 1, %s3218_s26 }
  0x4a   : > { %s54_s23 = ssub.s32 %s3222_s27, %s3371_s20  ;;  %p64_p9 = scmp.ne.s32.totalorder %s3218_s26, %s3214_s25 }
  0x4b   : > { %p55_p1 = scmp.eq.s32.totalorder %s54_s23, 0  ;;  %p65_p4 = scmp.eq.s32.totalorder %s3222_s27, 0 }
  0x4c   : > { %p2969_p5 = scmp.lt.s32.totalorder %s3222_s27, 2  ;;  %s269_s24 = sand.u32 1, %s3218_s26  }
  0x4d   : > { %s3382_s8 = scalar_select %p55_p1, %s3218_s26, %s57_s10  }
  0x4e   : > { %p66_p8 = por %p65_p4, %p64_p9  ;;  %s3384_s11 = sshll.u32 %s269_s24, 6 }
  0x4f   : > { %s2139_s13 = sshll.u32 %s3222_s27, 10  ;;  %s3754_s1 = sld [smem:[#allocation13_spill]] }
  0x50   : > { %s273_s16 = scalar_lea.vmem [#allocation2], %s3384_s11  ;;  %p3393_p7 = pnand %p2969_p5, %p66_p8 }
  0x51   : > { %s280_s17 = sshll.u32 %s273_s16, 4  ;;  %s3402_s10 = scalar_lea.hbm %s3733_s2, %s2139_s13  ;;  %s3397_s17 = int_to_ptr.vmem [resolvable:$true] %s280_s17 }
  0x52   : > { %s3404_s23 = scalar_lea.sflag [#allocation3], %s269_s24  ;;  %p3118_p11 = pneg %p3393_p7 }
  0x55   : > { %s3390_s12 = scalar_lea.hbm %s3754_s1, %s2139_s13  ;;  %s3121_s21 = scalar_lea.hbm %s3754_s1, 2048 }
  0x56   : > { %s3116_s14 = scalar_lea.hbm %s3390_s12, 1024  ;;  %p3122_p0 = scmp.lt.u32.totalorder %s3390_s12, %s3754_s1 }
  0x57   : > { %p3117_p10 = scmp.ne.s32.totalorder %s3390_s12, %s3116_s14  ;;  %p3123_p2 = scmp.lt.u32.totalorder %s3121_s21, %s3116_s14 }
  0x58   : > { %p3125_p6 = scmp.lt.u32.totalorder %s3116_s14, %s3390_s12 }
  0x59   : > { %p3119_p12 = pnand %p3118_p11, %p3117_p10  ;;  %p3124_p3 = por %p3123_p2, %p3122_p0 }
  0x5b   : > { %p3120_p13 = pneg %p3119_p12  ;;  %p3126_p9 = por %p3125_p6, %p3124_p3 }
  0x5d   : > { %p3127_p1 = pnand %p3126_p9, %p3120_p13 }
  0x5f   : > { %3130 = shalt.err (!%p3127_p1)
}
  0x60   : > { %s3131_s24 = scalar_lea.vmem %s3397_s17, 1024  ;;  %s3228_s13 = smov [#allocation2]  }
  0x61   : > { %p3132_p4 = scmp.ne.s32.totalorder %s3397_s17, %s3131_s24  ;;  %s3136_s18 = sshll.u32 %s3228_s13, 4  ;;  %s3137_s18 = int_to_ptr.vmem [resolvable:$false] %s3136_s18 }
  0x62   : > { %s3138_s3 = scalar_lea.vmem %s3137_s18, 2048  ;;  %p3139_p10 = scmp.lt.s32.totalorder %s3397_s17, %s3137_s18 }
  0x63   : > { %p3134_p5 = pnand %p3132_p4, %p3118_p11  ;;  %p3140_p12 = scmp.lt.s32.totalorder %s3138_s3, %s3131_s24 }
  0x65   : > { %p3135_p8 = pneg %p3134_p5  ;;  %p3141_p0 = por %p3140_p12, %p3139_p10 }
  0x67   : > { %p3142_p2 = pnand %p3141_p0, %p3135_p8 }
  0x69   : > { %3145 = shalt.err (!%p3142_p2)
}
  0x6a   : > { %s3756_s21 = smov 8   ;;  %s3757_s22 = smov 128  }
  0x6b   : > { %2963 = dma.hbm_to_vmem [thread:$0]  (!%p3393_p7), %s3390_s12, 1024, %s3397_s17, %s3404_s23, %s3757_s22, %s3757_s22, %s3756_s21  }
  0x6c   : > { %s294_s19 = scalar_lea.vmem [#allocation4], %s3384_s11  ;;  %s290_s15 = sand.u32 1, %s3222_s27  }
  0x6d   : > { %s301_s14 = sshll.u32 %s294_s19, 4  ;;  %s3439_s16 = scalar_lea.sflag [#allocation5], %s290_s15  ;;  %s3437_s14 = int_to_ptr.vmem [resolvable:$true] %s301_s14 }
  0x6e   : > { %s3146_s24 = scalar_lea.hbm %s3402_s10, 1024  ;;  %s3151_s3 = scalar_lea.hbm %s3733_s2, 2048 }
  0x6f   : > { %p3147_p13 = scmp.ne.s32.totalorder %s3402_s10, %s3146_s24  ;;  %p3152_p9 = scmp.lt.u32.totalorder %s3402_s10, %s3733_s2 }
  0x70   : > { %p3153_p1 = scmp.lt.u32.totalorder %s3151_s3, %s3146_s24  ;;  %p3155_p5 = scmp.lt.u32.totalorder %s3146_s24, %s3402_s10 }
  0x71   : > { %p3149_p3 = pnand %p3147_p13, %p3118_p11 }
  0x72   : > { %p3154_p4 = por %p3153_p1, %p3152_p9 }
  0x73   : > { %p3150_p6 = pneg %p3149_p3 }
  0x74   : > { %p3156_p8 = por %p3155_p5, %p3154_p4 }
  0x76   : > { %p3157_p10 = pnand %p3156_p8, %p3150_p6 }
  0x78   : > { %3160 = shalt.err (!%p3157_p10)
}
  0x79   : > { %s3161_s27 = scalar_lea.vmem %s3437_s14, 1024  ;;  %s3229_s11 = smov [#allocation4]  }
  0x7a   : > { %p3162_p12 = scmp.ne.s32.totalorder %s3437_s14, %s3161_s27  ;;  %s3166_s12 = sshll.u32 %s3229_s11, 4  ;;  %s3167_s12 = int_to_ptr.vmem [resolvable:$false] %s3166_s12 }
  0x7b   : > { %s3168_s1 = scalar_lea.vmem %s3167_s12, 2048  ;;  %p3169_p13 = scmp.lt.s32.totalorder %s3437_s14, %s3167_s12 }
  0x7c   : > { %p3164_p0 = pnand %p3162_p12, %p3118_p11  ;;  %p3170_p3 = scmp.lt.s32.totalorder %s3168_s1, %s3161_s27 }
  0x7e   : > { %p3165_p2 = pneg %p3164_p0  ;;  %p3171_p9 = por %p3170_p3, %p3169_p13 }
  0x80   : > { %p3172_p1 = pnand %p3171_p9, %p3165_p2 }
  0x82   : > { %3175 = shalt.err (!%p3172_p1)
}
  0x83   : > { %2966 = dma.hbm_to_vmem [thread:$0]  (!%p3393_p7), %s3402_s10, 1024, %s3437_s14, %s3439_s16, %s3757_s22, %s3757_s22, %s3756_s21  }
  0x84   : > { %p3758_p11 = scmp.ne.s32.totalorder %s3750_s30, 0 }
  0x85   : > { %s315_s5 = sand.u32 (!%p3758_p11), 1, %s3214_s25   ;;  %p3759_p6 = scmp.ne.s32.totalorder (!%p3758_p11), %s3749_s29, 0 }
  0x86   : > { %313 = sbr.rel (%p3758_p11) target bundleno = 2310 (0x906), region = 48  ;;  %s2130_s17 = sshll.u32 (!%p3758_p11), %s315_s5, 6 }
  0x87   : > { %s316_s23 = scalar_lea.sflag (!%p3758_p11), [#allocation3], %s315_s5  ;;  %s3471_s19 = scalar_lea.vmem (!%p3758_p11), [#allocation2], %s2130_s17 }
  0x8d   : > { %3193 = dma.done.wait (%p3759_p6), %s316_s23, 1024  }
  0x8e   : > { %3195 = vsyncadd (%p3759_p6), %s316_s23, 4294966272  ;;  %s324_s9 = sand.u32 1, %s3291_s28   ;;  %s3478_s10 = scalar_lea.vmem [#allocation4], %s2130_s17 }
  0x8f   : > { %s325_s15 = scalar_lea.sflag [#allocation5], %s324_s9 }
  0x90   : > { %3197 = dma.done.wait (%p3759_p6), %s325_s15, 1024  }
  0x91   : > { %3199 = vsyncadd (%p3759_p6), %s325_s15, 4294966272  ;;  %p3760_p7 = scmp.eq.s32.totalorder %s3291_s28, 0 }
  0x93   : > { %3201 = dma.done.wait (%p3760_p7), [#allocation5], 8192   ;;  %p3761_p4 = pmov %p3760_p7 }
  0x95   : > { %3203 = vsyncadd (%p3761_p4), [#allocation5], 4294959104  ;;  %p3762_p5 = pmov %p3761_p4 }
  0x96   : > { %p3763_p8 = pmov %p3761_p4 }
  0x97   : > { %3205 = dma.done.wait (%p3762_p5), [#allocation8], 8192  }
  0x98   : > { %3207 = vsyncadd (%p3763_p8), [#allocation8], 4294959104  ;;  %v395_v0 = vld [vmem:[#allocation6] sm:$0xff]  ;;  %v396_v1 = vld [vmem:[#allocation6 + $0x8] sm:$0xff]  ;;  %p375_p10 = scmp.lt.s32.totalorder %s3291_s28, 1  ;;  %vm1710_vm1 = vcmask 1041409  }
  0x99   : > { %v397_v2 = vld [vmem:[#allocation6 + $0x10] sm:$0xff]  ;;  %v2685_v3 = vpack.c.bf16 %v396_v1, %v395_v0  ;;  %v398_v4 = vld [vmem:[#allocation6 + $0x18] sm:$0xff]  ;;  %v399_v6 = vld [vmem:[#allocation6 + $0x20] sm:$0xff]  ;;  %vm1712_vm2 = vcmask 1042434   ;;  %vm1714_vm3 = vcmask 1043459   ;;  %vm1716_vm4 = vcmask 1044484  }
  0x9a   : > { %v2689_v5 = vpack.c.bf16 %v398_v4, %v397_v2  ;;  %v400_v7 = vld [vmem:[#allocation6 + $0x28] sm:$0xff]  ;;  %v387_v9 = vld [vmem:[%s3471_s19] sm:$0xff]  ;;  %v401_v10 = vld [vmem:[#allocation6 + $0x30] sm:$0xff]  ;;  %s3769_s28 = smov (!%p375_p10, %s3291_s28), 1  ;;  %vm1718_vm5 = vcmask 1045509   ;;  %vm1720_vm6 = vcmask 1046534  }
  0x9b   : > { %2686 = vmatprep.subr.bf16.mxu0 %v2685_v3  ;;  %v2693_v8 = vpack.c.bf16 %v400_v7, %v399_v6  ;;  %v402_v11 = vld [vmem:[#allocation6 + $0x38] sm:$0xff]  ;;  %2365 = vmatprep.mubr.f32.mxu0 %v387_v9  ;;  %v529_v12 = vld [vmem:[#allocation6 + $0x80] sm:$0xff]  ;;  %v530_v13 = vld [vmem:[#allocation6 + $0x88] sm:$0xff]  ;;  %s2134_s21 = sshll.u32 %s3769_s28, 3  ;;  %vm1722_vm7 = vcmask 1047559   ;;  %vm1725_vm8 = vcmask 64512  }
  0x9c   : > { %2688 = vmatpush3.bf16.msra.mxu0 %v2685_v3  ;;  %v531_v14 = vld [vmem:[#allocation6 + $0x90] sm:$0xff]  ;;  %v2697_v15 = vpack.c.bf16 %v402_v11, %v401_v10  ;;  %v403_v16 = vld [vmem:[#allocation6 + $0x40] sm:$0xff]  ;;  %v2717_v17 = vpack.c.bf16 %v530_v13, %v529_v12  ;;  %v532_v18 = vld [vmem:[#allocation6 + $0x98] sm:$0xff]  ;;  %v411_v13 = vlaneseq  ;;  %s378_s16 = scalar_lea.vmem %s3731_s0, %s2134_s21  ;;  %s384_s27 = scalar_lea.vmem %s3738_s7, %s2134_s21 }
  0x9d   : > { %2690 = vmatprep.subr.bf16.mxu0 %v2689_v5  ;;  %v404_v19 = vld [vmem:[#allocation6 + $0x48] sm:$0xff]  ;;  %v2721_v20 = vpack.c.bf16 %v532_v18, %v531_v14  ;;  %v533_v21 = vld [vmem:[#allocation6 + $0xa0] sm:$0xff]  ;;  %v405_v24 = vld [vmem:[#allocation6 + $0x50] sm:$0xff] }
  0x9e   : > { %v534_v22 = vld [vmem:[#allocation6 + $0xa8] sm:$0xff]  ;;  %2718 = vmatprep.subr.bf16.mxu1 %v2717_v17  ;;  %v2701_v23 = vpack.c.bf16 %v404_v19, %v403_v16  ;;  %v406_v26 = vld [vmem:[#allocation6 + $0x58] sm:$0xff]  ;;  %v535_v27 = vld [vmem:[#allocation6 + $0xb0] sm:$0xff]  ;;  %v3501_v14 = vshrl.u32 %v411_v13, 7 }
  0x9f   : > { %2720 = vmatpush3.bf16.msra.mxu1 %v2717_v17  ;;  %v2725_v25 = vpack.c.bf16 %v534_v22, %v533_v21  ;;  %v536_v28 = vld [vmem:[#allocation6 + $0xb8] sm:$0xff]  ;;  %v2705_v29 = vpack.c.bf16 %v406_v26, %v405_v24  ;;  %v407_v30 = vld [vmem:[#allocation6 + $0x60] sm:$0xff]  ;;  %v408_v32 = vld [vmem:[#allocation6 + $0x68] sm:$0xff] }
  0xa0   : > { %2692 = vmatpush3.bf16.msra.mxu0 %v2689_v5  ;;  %2722 = vmatprep.subr.bf16.mxu1 %v2721_v20  ;;  %v2729_v31 = vpack.c.bf16 %v536_v28, %v535_v27  ;;  %v537_v33 = vld [vmem:[#allocation6 + $0xc0] sm:$0xff]  ;;  %v538_v34 = vld [vmem:[#allocation6 + $0xc8] sm:$0xff]  ;;  %v2709_v35 = vpack.c.bf16 %v408_v32, %v407_v30  ;;  %v409_v36 = vld [vmem:[#allocation6 + $0x70] sm:$0xff] }
  0xa1   : > { %2694 = vmatprep.subr.bf16.mxu0 %v2693_v8  ;;  %v2733_v37 = vpack.c.bf16 %v538_v34, %v537_v33  ;;  %v410_v38 = vld [vmem:[#allocation6 + $0x78] sm:$0xff]  ;;  %v539_v39 = vld [vmem:[#allocation6 + $0xd0] sm:$0xff]  ;;  %v541_v43 = vld [vmem:[#allocation6 + $0xe0] sm:$0xff] }
  0xa2   : > { %v540_v40 = vld [vmem:[#allocation6 + $0xd8] sm:$0xff]  ;;  %v2713_v41 = vpack.c.bf16 %v410_v38, %v409_v36  ;;  %v542_v44 = vld [vmem:[#allocation6 + $0xe8] sm:$0xff]  ;;  %v389_v47 = vld [vmem:[%s3471_s19 + $0x10] sm:$0xff] }
  0xa3   : > { %2724 = vmatpush3.bf16.msra.mxu1 %v2721_v20  ;;  %v2737_v42 = vpack.c.bf16 %v540_v40, %v539_v39  ;;  %v2741_v45 = vpack.c.bf16 %v542_v44, %v541_v43  ;;  %v388_v46 = vld [vmem:[%s3471_s19 + $0x8] sm:$0xff]  ;;  %v390_v48 = vld [vmem:[%s3471_s19 + $0x18] sm:$0xff]  ;;  %v391_v49 = vld [vmem:[%s3471_s19 + $0x20] sm:$0xff] }
  0xa4   : > { %2696 = vmatpush3.bf16.msra.mxu0 %v2693_v8  ;;  %2726 = vmatprep.subr.bf16.mxu1 %v2725_v25  ;;  %v392_v50 = vld [vmem:[%s3471_s19 + $0x28] sm:$0xff]  ;;  %v393_v51 = vld [vmem:[%s3471_s19 + $0x30] sm:$0xff]  ;;  %v394_v52 = vld [vmem:[%s3471_s19 + $0x38] sm:$0xff] }
  0xa5   : > { %2698 = vmatprep.subr.bf16.mxu0 %v2697_v15  ;;  %v543_v53 = vld [vmem:[#allocation6 + $0xf0] sm:$0xff]  ;;  %v544_v54 = vld [vmem:[#allocation6 + $0xf8] sm:$0xff]  ;;  %v663_v56 = vld [vmem:[#allocation6 + $0x100] sm:$0xff] }
  0xa6   : > { %v2745_v55 = vpack.c.bf16 %v544_v54, %v543_v53  ;;  %v664_v57 = vld [vmem:[#allocation6 + $0x108] sm:$0xff]  ;;  %v665_v58 = vld [vmem:[#allocation6 + $0x110] sm:$0xff]  ;;  %v666_v60 = vld [vmem:[#allocation6 + $0x118] sm:$0xff] }
  0xa7   : > { %2728 = vmatpush3.bf16.msra.mxu1 %v2725_v25  ;;  %v2749_v59 = vpack.c.bf16 %v664_v57, %v663_v56  ;;  %v2753_v61 = vpack.c.bf16 %v666_v60, %v665_v58  ;;  %v667_v62 = vld [vmem:[#allocation6 + $0x120] sm:$0xff]  ;;  %v668_v63 = vld [vmem:[#allocation6 + $0x128] sm:$0xff]  ;;  %v669_v1 = vld [vmem:[#allocation6 + $0x130] sm:$0xff] }
  0xa8   : > { %2700 = vmatpush3.bf16.msra.mxu0 %v2697_v15  ;;  %2730 = vmatprep.subr.bf16.mxu1 %v2729_v31  ;;  %v2757_v0 = vpack.c.bf16 %v668_v63, %v667_v62  ;;  %v670_v2 = vld [vmem:[#allocation6 + $0x138] sm:$0xff]  ;;  %v671_v4 = vld [vmem:[#allocation6 + $0x140] sm:$0xff]  ;;  %v672_v5 = vld [vmem:[#allocation6 + $0x148] sm:$0xff]  ;;  %v3504_v15 = vsub.s32 0, %v3501_v14 }
  0xa9   : > { %2702 = vmatprep.subr.bf16.mxu0 %v2701_v23  ;;  %v2761_v3 = vpack.c.bf16 %v670_v2, %v669_v1  ;;  %v2765_v6 = vpack.c.bf16 %v672_v5, %v671_v4  ;;  %v673_v7 = vld [vmem:[#allocation6 + $0x150] sm:$0xff]  ;;  %v674_v8 = vld [vmem:[#allocation6 + $0x158] sm:$0xff]  ;;  %v675_v10 = vld [vmem:[#allocation6 + $0x160] sm:$0xff] }
  0xaa   : > { %v2769_v9 = vpack.c.bf16 %v674_v8, %v673_v7  ;;  %v676_v11 = vld [vmem:[#allocation6 + $0x168] sm:$0xff]  ;;  %v3509_v16 = vld [vmem:[%s3735_s4] sm:$0xf]  ;;  %v678_v43 = vld [vmem:[#allocation6 + $0x178] sm:$0xff]  ;;  %v3527_v8 = vsub.s32 1, %v3501_v14 }
  0xab   : > { %2732 = vmatpush3.bf16.msra.mxu1 %v2729_v31  ;;  %v2773_v12 = vpack.c.bf16 %v676_v11, %v675_v10  ;;  %v414_v17 = vrot.slane %v3509_v16, %v3504_v15  ;;  %v800_v53 = vld [vmem:[#allocation6 + $0x198] sm:$0xff]  ;;  %v802_v56 = vld [vmem:[#allocation6 + $0x1a8] sm:$0xff]  ;;  %v1457_v58 = vld [vmem:[%s378_s16] sm:$0xff] }
  0xac   : > { %2704 = vmatpush3.bf16.msra.mxu0 %v2701_v23  ;;  %2734 = vmatprep.subr.bf16.mxu1 %v2733_v37  ;;  %v804_v60 = vld [vmem:[#allocation6 + $0x1b8] sm:$0xff]  ;;  %v805_v63 = vld [vmem:[#allocation6 + $0x1c0] sm:$0xff]  ;;  %v807_v2 = vld [vmem:[#allocation6 + $0x1d0] sm:$0xff] }
  0xad   : > { %2706 = vmatprep.subr.bf16.mxu0 %v2705_v29  ;;  %v809_v5 = vld [vmem:[#allocation6 + $0x1e0] sm:$0xff] }
  0xaf   : > { %2736 = vmatpush3.bf16.msra.mxu1 %v2733_v37 }
  0xb0   : > { %2708 = vmatpush3.bf16.msra.mxu0 %v2705_v29  ;;  %2738 = vmatprep.subr.bf16.mxu1 %v2737_v42 }
  0xb1   : > { %2710 = vmatprep.subr.bf16.mxu0 %v2709_v35 }
  0xb3   : > { %2740 = vmatpush3.bf16.msra.mxu1 %v2737_v42  ;;  %v677_v42 = vld [vmem:[#allocation6 + $0x170] sm:$0xff] }
  0xb4   : > { %2712 = vmatpush3.bf16.msra.mxu0 %v2709_v35  ;;  %2742 = vmatprep.subr.bf16.mxu1 %v2741_v45  ;;  %v2777_v44 = vpack.c.bf16 %v678_v43, %v677_v42 }
  0xb5   : > { %2714 = vmatprep.subr.bf16.mxu0 %v2713_v41 }
  0xb7   : > { %2744 = vmatpush3.bf16.msra.mxu1 %v2741_v45  ;;  %v930_v45 = vld [vmem:[#allocation7] sm:$0xff] }
  0xb8   : > { %2716 = vmatpush3.bf16.msra.mxu0 %v2713_v41  ;;  %2746 = vmatprep.subr.bf16.mxu1 %v2745_v55 }
  0xb9   : > { %2750 = vmatprep.subr.bf16.mxu0 %v2749_v59 }
  0xbb   : > { %2366 = vmatmul.mubr.f32.vlgmr.msra.gmra.mrb[0].mxu0 %v388_v46  ;;  %2748 = vmatpush3.bf16.msra.mxu1 %v2745_v55  ;;  %v931_v46 = vld [vmem:[#allocation7 + $0x8] sm:$0xff]  ;;  %v801_v55 = vld [vmem:[#allocation6 + $0x1a0] sm:$0xff] }
  0xbc   : > { %2368 = vmatprep.mubr.f32.mxu0 %v389_v47  ;;  %2752 = vmatpush3.bf16.msra.mxu0 %v2749_v59  ;;  %v3513_v47 = vpack.c.bf16 %v931_v46, %v930_v45  ;;  %v2789_v57 = vpack.c.bf16 %v802_v56, %v801_v55  ;;  %v803_v59 = vld [vmem:[#allocation6 + $0x1b0] sm:$0xff]  ;;  %v938_v45 = vld [vmem:[#allocation7 + $0x40] sm:$0xff]  ;;  %v939_v46 = vld [vmem:[#allocation7 + $0x48] sm:$0xff] }
  0xbd   : > { %2754 = vmatprep.subr.bf16.mxu0 %v2753_v61  ;;  %v2793_v62 = vpack.c.bf16 %v804_v60, %v803_v59  ;;  %v943_v55 = vld [vmem:[#allocation7 + $0x68] sm:$0xff] }
  0xbe   : > { %v923_v60 = vld [vmem:[%s3478_s10 + $0x8] sm:$0xff] }
  0xbf   : > { %2369 = vmatmul.mubr.f32.gmra.mrb[2].mxu0 %v390_v48  ;;  %v797_v48 = vld [vmem:[#allocation6 + $0x180] sm:$0xff] }
  0xc0   : > { %2371 = vmatprep.mubr.f32.mxu0 %v391_v49  ;;  %2756 = vmatpush3.bf16.msra.mxu0 %v2753_v61  ;;  %v798_v49 = vld [vmem:[#allocation6 + $0x188] sm:$0xff]  ;;  %v1578_v61 = vcvt.s32.f32 %v1457_v58 }
  0xc1   : > { %2758 = vmatprep.subr.bf16.mxu0 %v2757_v0 }
  0xc3   : > { %2372 = vmatmul.mubr.f32.gmra.mrb[4].mxu0 %v392_v50  ;;  %v799_v50 = vld [vmem:[#allocation6 + $0x190] sm:$0xff] }
  0xc4   : > { %2374 = vmatprep.mubr.f32.mxu0 %v393_v51  ;;  %2760 = vmatpush3.bf16.msra.mxu0 %v2757_v0  ;;  %v3230_v51 = vmov 0   ;;  %v2785_v54 = vpack.c.bf16 %v800_v53, %v799_v50  ;;  %v806_v0 = vld [vmem:[#allocation6 + $0x1c8] sm:$0xff]  ;;  %v922_v50 = vld [vmem:[%s3478_s10] sm:$0xff] }
  0xc5   : > { %2762 = vmatprep.subr.bf16.mxu0 %v2761_v3  ;;  %3010 = vset.pattern.permute.xlu0 %v3230_v51  ;;  %v2797_v1 = vpack.c.bf16 %v806_v0, %v805_v63  ;;  %v926_v63 = vld [vmem:[%s3478_s10 + $0x20] sm:$0xff]  ;;  %v927_v0 = vld [vmem:[%s3478_s10 + $0x28] sm:$0xff] }
  0xc6   : > { %3011 = vset.pattern.permute.xlu1 %v3230_v51  ;;  %1461 = vperm.xlu0 %3010, %v1457_v58   ;;  %v940_v51 = vld [vmem:[#allocation7 + $0x50] sm:$0xff]  ;;  %v945_v58 = vld [vmem:[#allocation7 + $0x78] sm:$0xff] }
  0xc7   : > { %2375 = vmatmul.mubr.f32.gmra.mrb[6].mxu0 %v394_v52  ;;  %v2781_v52 = vpack.c.bf16 %v798_v49, %v797_v48  ;;  %v2829_v49 = vpack.c.bf16 %v939_v46, %v938_v45  ;;  %v1068_v45 = vld [vmem:[#allocation7 + $0xa0] sm:$0xff]  ;;  %v1069_v46 = vld [vmem:[#allocation7 + $0xa8] sm:$0xff] }
  0xc8   : > { %2764 = vmatpush3.bf16.msra.mxu0 %v2761_v3  ;;  %v808_v3 = vld [vmem:[#allocation6 + $0x1d8] sm:$0xff] }
  0xc9   : > { %2766 = vmatprep.subr.bf16.mxu0 %v2765_v6  ;;  %2782 = vmatprep.subr.bf16.mxu1 %v2781_v52  ;;  %v2801_v4 = vpack.c.bf16 %v808_v3, %v807_v2  ;;  %v929_v2 = vld [vmem:[%s3478_s10 + $0x38] sm:$0xff]  ;;  %v811_v3 = vld [vmem:[#allocation6 + $0x1f0] sm:$0xff] }
  0xca   : > { %1581 = vperm.xlu0 %3010, %v1578_v61   ;;  %v924_v61 = vld [vmem:[%s3478_s10 + $0x10] sm:$0xff] }
  0xcc   : > { %2768 = vmatpush3.bf16.msra.mxu0 %v2765_v6  ;;  %v810_v6 = vld [vmem:[#allocation6 + $0x1e8] sm:$0xff] }
  0xcd   : > { %2770 = vmatprep.subr.bf16.mxu0 %v2769_v9  ;;  %v2805_v7 = vpack.c.bf16 %v810_v6, %v809_v5  ;;  %v1064_v6 = vld [vmem:[#allocation7 + $0x80] sm:$0xff] }
  0xd0   : > { %2772 = vmatpush3.bf16.msra.mxu0 %v2769_v9  ;;  %v548_v9 = vrot.slane %v3509_v16, %v3527_v8 }
  0xd1   : > { %2774 = vmatprep.subr.bf16.mxu0 %v2773_v12 }
  0xd4   : > { %2776 = vmatpush3.bf16.msra.mxu0 %v2773_v12 }
  0xd5   : > { %2778 = vmatprep.subr.bf16.mxu0 %v2777_v44 }
  0xd8   : > { %2780 = vmatpush3.bf16.msra.mxu0 %v2777_v44 }
  0xd9   : > { %2814 = vmatprep.subr.bf16.mxu0 %v3513_v47 }
 0x18e   : > { %v2367_v18 = vpop.f32.mrb[0].mxu0 }
 0x18f   : > { %v487_v19 = vadd.f32 %v2367_v18, %v414_v17  ;;  %v481_v20 = vpop.f32.mrb[1].mxu0  ;;  %v932_v18 = vld [vmem:[#allocation7 + $0x10] sm:$0xff] }
 0x190   : > { %v482_v21 = vadd.f32 %v481_v20, %v414_v17 }
 0x191   : > { %v521_v24 = vmax.f32 %v487_v19, 0.0  ;;  %v933_v19 = vld [vmem:[#allocation7 + $0x18] sm:$0xff] }
 0x192   : > { %v2370_v22 = vpop.f32.mrb[2].mxu0  ;;  %v520_v23 = vmax.f32 %v482_v21, 0.0 }
 0x193   : > { %v497_v25 = vadd.f32 %v2370_v22, %v414_v17  ;;  %v491_v26 = vpop.f32.mrb[3].mxu0 }
 0x194   : > { %2409 = vmatprep.mubr.f32.mxu1 %v520_v23  ;;  %v492_v27 = vadd.f32 %v491_v26, %v414_v17 }
 0x195   : > { %v523_v28 = vmax.f32 %v497_v25, 0.0  ;;  %2410 = vmatmul.mubr.f32.vlgmr.msra.gmra.mrb[0].mxu1 %v521_v24  ;;  %v2817_v25 = vpack.c.bf16 %v933_v19, %v932_v18  ;;  %v3231_v18 = vmov 0.0  }
 0x196   : > { %v522_v29 = vmax.f32 %v492_v27, 0.0  ;;  %v2373_v30 = vpop.f32.mrb[4].mxu0  ;;  %2784 = vmatpush3.bf16.msra.mxu1 %v2781_v52  ;;  %v934_v27 = vld [vmem:[#allocation7 + $0x20] sm:$0xff]  ;;  %v941_v52 = vld [vmem:[#allocation7 + $0x58] sm:$0xff] }
 0x197   : > { %v507_v31 = vadd.f32 %v2373_v30, %v414_v17  ;;  %v501_v32 = vpop.f32.mrb[5].mxu0  ;;  %2786 = vmatprep.subr.bf16.mxu1 %v2785_v54  ;;  %v2833_v53 = vpack.c.bf16 %v941_v52, %v940_v51  ;;  %v2853_v52 = vpack.c.bf16 %v1069_v46, %v1068_v45 }
 0x198   : > { %v502_v33 = vadd.f32 %v501_v32, %v414_v17  ;;  %2412 = vmatprep.mubr.f32.mxu1 %v522_v29 }
 0x199   : > { %v525_v34 = vmax.f32 %v507_v31, 0.0  ;;  %2413 = vmatmul.mubr.f32.gmra.mrb[2].mxu1 %v523_v28  ;;  %v935_v28 = vld [vmem:[#allocation7 + $0x28] sm:$0xff] }
 0x19a   : > { %v524_v35 = vmax.f32 %v502_v33, 0.0  ;;  %v2376_v36 = vpop.f32.mrb[6].mxu0  ;;  %2788 = vmatpush3.bf16.msra.mxu1 %v2785_v54  ;;  %v942_v54 = vld [vmem:[#allocation7 + $0x60] sm:$0xff] }
 0x19b   : > { %v517_v37 = vadd.f32 %v2376_v36, %v414_v17  ;;  %v511_v38 = vpop.f32.mrb[7].mxu0  ;;  %2790 = vmatprep.subr.bf16.mxu1 %v2789_v57  ;;  %v936_v36 = vld [vmem:[#allocation7 + $0x30] sm:$0xff]  ;;  %v2837_v56 = vpack.c.bf16 %v943_v55, %v942_v54  ;;  %v1071_v55 = vld [vmem:[#allocation7 + $0xb8] sm:$0xff] }
 0x19c   : > { %v512_v39 = vadd.f32 %v511_v38, %v414_v17  ;;  %2415 = vmatprep.mubr.f32.mxu1 %v524_v35  ;;  %v1070_v54 = vld [vmem:[#allocation7 + $0xb0] sm:$0xff] }
 0x19d   : > { %v527_v40 = vmax.f32 %v517_v37, 0.0  ;;  %2416 = vmatmul.mubr.f32.gmra.mrb[4].mxu1 %v525_v34  ;;  %v2821_v34 = vpack.c.bf16 %v935_v28, %v934_v27  ;;  %v937_v37 = vld [vmem:[#allocation7 + $0x38] sm:$0xff] }
 0x19e   : > { %v526_v41 = vmax.f32 %v512_v39, 0.0  ;;  %2792 = vmatpush3.bf16.msra.mxu1 %v2789_v57  ;;  %v2825_v43 = vpack.c.bf16 %v937_v37, %v936_v36  ;;  %v944_v57 = vld [vmem:[#allocation7 + $0x70] sm:$0xff]  ;;  %v1067_v37 = vld [vmem:[#allocation7 + $0x98] sm:$0xff] }
 0x19f   : > { %2794 = vmatprep.subr.bf16.mxu1 %v2793_v62  ;;  %v2841_v59 = vpack.c.bf16 %v945_v58, %v944_v57  ;;  %v1066_v36 = vld [vmem:[#allocation7 + $0x90] sm:$0xff] }
 0x1a0   : > { %2418 = vmatprep.mubr.f32.mxu1 %v526_v41 }
 0x1a1   : > { %2419 = vmatmul.mubr.f32.gmra.mrb[6].mxu1 %v527_v40 }
 0x1a2   : > { %2796 = vmatpush3.bf16.msra.mxu1 %v2793_v62  ;;  %v925_v62 = vld [vmem:[%s3478_s10 + $0x18] sm:$0xff] }
 0x1a3   : > { %2798 = vmatprep.subr.bf16.mxu1 %v2797_v1 }
 0x1a6   : > { %2800 = vmatpush3.bf16.msra.mxu1 %v2797_v1  ;;  %v928_v1 = vld [vmem:[%s3478_s10 + $0x30] sm:$0xff] }
 0x1a7   : > { %2802 = vmatprep.subr.bf16.mxu1 %v2801_v4 }
 0x1aa   : > { %2804 = vmatpush3.bf16.msra.mxu1 %v2801_v4  ;;  %v812_v4 = vld [vmem:[#allocation6 + $0x1f8] sm:$0xff] }
 0x1ab   : > { %2806 = vmatprep.subr.bf16.mxu1 %v2805_v7  ;;  %v2809_v5 = vpack.c.bf16 %v812_v4, %v811_v3  ;;  %v1074_v4 = vld [vmem:[#allocation7 + $0xd0] sm:$0xff] }
 0x1ae   : > { %2808 = vmatpush3.bf16.msra.mxu1 %v2805_v7  ;;  %v1065_v7 = vld [vmem:[#allocation7 + $0x88] sm:$0xff] }
 0x1af   : > { %2810 = vmatprep.subr.bf16.mxu1 %v2809_v5 }
 0x1b2   : > { %2812 = vmatpush3.bf16.msra.mxu1 %v2809_v5  ;;  %v1075_v5 = vld [vmem:[#allocation7 + $0xd8] sm:$0xff] }
 0x268   : > { %v2411_v10 = vpop.f32.mrb[0].mxu1 }
 0x269   : > { %v621_v11 = vadd.f32 %v2411_v10, %v548_v9  ;;  %v615_v12 = vpop.f32.mrb[1].mxu1  ;;  %v3541_v10 = vand.u32 127, %v411_v13  ;;  %v3554_v13 = vsub.s32 3, %v3501_v14 }
 0x26a   : > { %v616_v17 = vadd.f32 %v615_v12, %v548_v9  ;;  %v3544_v12 = vsub.s32 2, %v3501_v14 }
 0x26b   : > { %v655_v22 = vmax.f32 %v621_v11, 0.0  ;;  %v1462_v11 = vpop.permute.xlu0 %1461 }
 0x26c   : > { %v654_v20 = vmax.f32 %v616_v17, 0.0  ;;  %v2414_v21 = vpop.f32.mrb[2].mxu1  ;;  %vm1463_vm0 = vcmp.lt.s32.totalorder %v3541_v10, %v1462_v11  ;;  %v3548_v17 = vsub.s32 4, %v3501_v14 }
 0x26d   : > { %v631_v23 = vadd.f32 %v2414_v21, %v548_v9  ;;  %v625_v24 = vpop.f32.mrb[3].mxu1  ;;  %v2136_v19 = vsel %vm1463_vm0, 1.0, %v3231_v18  ;;  %v3575_v18 = vld [vmem:[%s3737_s6] sm:$0xf] }
 0x26e   : > { %2453 = vmatprep.mubr.f32.mxu0 %v654_v20  ;;  %v626_v26 = vadd.f32 %v625_v24, %v548_v9  ;;  %v1469_v20 = vrot.slane %v2136_v19, %v3504_v15  ;;  %v1483_v21 = vrot.slane %v2136_v19, %v3544_v12  ;;  %v3558_v24 = vsub.s32 6, %v3501_v14 }
 0x26f   : > { %v657_v29 = vmax.f32 %v631_v23, 0.0  ;;  %2454 = vmatmul.mubr.f32.vlgmr.msra.gmra.mrb[8].mxu0 %v655_v22  ;;  %v1476_v22 = vrot.slane %v2136_v19, %v3527_v8  ;;  %v1497_v23 = vrot.slane %v2136_v19, %v3548_v17 }
 0x270   : > { %v656_v30 = vmax.f32 %v626_v26, 0.0  ;;  %2816 = vmatpush3.bf16.msra.mxu0 %v3513_v47  ;;  %v2417_v31 = vpop.f32.mrb[4].mxu1  ;;  %1471 = vbcast.lane.b32.xlu1 %v1469_v20, 256  ;;  %v3562_v26 = vsub.s32 5, %v3501_v14  ;;  %v1511_v27 = vrot.slane %v2136_v19, %v3558_v24  ;;  %v1079_v20 = vld [vmem:[#allocation7 + $0xf8] sm:$0xff] }
 0x271   : > { %v641_v32 = vadd.f32 %v2417_v31, %v548_v9  ;;  %2818 = vmatprep.subr.bf16.mxu0 %v2817_v25  ;;  %v635_v33 = vpop.f32.mrb[5].mxu1  ;;  %1485 = vbcast.lane.b32.xlu0 %v1483_v21, 256  ;;  %v682_v31 = vrot.slane %v3509_v16, %v3544_v12  ;;  %v949_v21 = vrot.slane %v3575_v18, %v3504_v15 }
 0x272   : > { %v636_v35 = vadd.f32 %v635_v33, %v548_v9  ;;  %2456 = vmatprep.mubr.f32.mxu0 %v656_v30  ;;  %v1504_v28 = vrot.slane %v2136_v19, %v3562_v26 }
 0x273   : > { %v659_v38 = vmax.f32 %v641_v32, 0.0  ;;  %2457 = vmatmul.mubr.f32.gmra.mrb[10].mxu0 %v657_v29  ;;  %v3567_v29 = vsub.s32 7, %v3501_v14 }
 0x274   : > { %v658_v39 = vmax.f32 %v636_v35, 0.0  ;;  %2820 = vmatpush3.bf16.msra.mxu0 %v2817_v25  ;;  %v2420_v40 = vpop.f32.mrb[6].mxu1  ;;  %1478 = vbcast.lane.b32.xlu1 %v1476_v22, 256  ;;  %v1490_v25 = vrot.slane %v2136_v19, %v3554_v13 }
 0x275   : > { %v651_v41 = vadd.f32 %v2420_v40, %v548_v9  ;;  %2822 = vmatprep.subr.bf16.mxu0 %v2821_v34  ;;  %v645_v42 = vpop.f32.mrb[7].mxu1  ;;  %1499 = vbcast.lane.b32.xlu0 %v1497_v23, 256  ;;  %v1518_v30 = vrot.slane %v2136_v19, %v3567_v29  ;;  %v1078_v19 = vld [vmem:[#allocation7 + $0xf0] sm:$0xff] }
 0x276   : > { %v646_v44 = vadd.f32 %v645_v42, %v548_v9  ;;  %2459 = vmatprep.mubr.f32.mxu0 %v658_v39  ;;  %v2845_v9 = vpack.c.bf16 %v1065_v7, %v1064_v6  ;;  %v2865_v6 = vpack.c.bf16 %v1075_v5, %v1074_v4  ;;  %v1076_v7 = vld [vmem:[#allocation7 + $0xe0] sm:$0xff]  ;;  %v2873_v22 = vpack.c.bf16 %v1079_v20, %v1078_v19  ;;  %v1211_v5 = vld [vmem:[#allocation7 + $0x168] sm:$0xff] }
 0x277   : > { %v661_v47 = vmax.f32 %v651_v41, 0.0  ;;  %2460 = vmatmul.mubr.f32.gmra.mrb[12].mxu0 %v659_v38  ;;  %v1210_v4 = vld [vmem:[#allocation7 + $0x160] sm:$0xff]  ;;  %v1333_v20 = vld [vmem:[#allocation7 + $0x188] sm:$0xff] }
 0x278   : > { %v660_v48 = vmax.f32 %v646_v44, 0.0  ;;  %2824 = vmatpush3.bf16.msra.mxu0 %v2821_v34  ;;  %2846 = vmatprep.subr.bf16.mxu1 %v2845_v9  ;;  %v1332_v19 = vld [vmem:[#allocation7 + $0x180] sm:$0xff] }
 0x279   : > { %2826 = vmatprep.subr.bf16.mxu0 %v2825_v43  ;;  %1492 = vbcast.lane.b32.xlu1 %v1490_v25, 256 }
 0x27a   : > { %2462 = vmatprep.mubr.f32.mxu0 %v660_v48  ;;  %1513 = vbcast.lane.b32.xlu0 %v1511_v27, 256 }
 0x27b   : > { %2463 = vmatmul.mubr.f32.gmra.mrb[14].mxu0 %v661_v47 }
 0x27c   : > { %2828 = vmatpush3.bf16.msra.mxu0 %v2825_v43  ;;  %2541 = vmatprep.mubr.f32.mxu0 %v922_v50  ;;  %v2849_v43 = vpack.c.bf16 %v1067_v37, %v1066_v36 }
 0x27d   : > { %2830 = vmatprep.subr.bf16.mxu0 %v2829_v49  ;;  %1506 = vbcast.lane.b32.xlu1 %v1504_v28, 256 }
 0x280   : > { %2832 = vmatpush3.bf16.msra.mxu0 %v2829_v49 }
 0x281   : > { %2834 = vmatprep.subr.bf16.mxu0 %v2833_v53  ;;  %1520 = vbcast.lane.b32.xlu1 %v1518_v30, 256 }
 0x284   : > { %2836 = vmatpush3.bf16.msra.mxu0 %v2833_v53 }
 0x285   : > { %2838 = vmatprep.subr.bf16.mxu0 %v2837_v56 }
 0x288   : > { %2840 = vmatpush3.bf16.msra.mxu0 %v2837_v56 }
 0x289   : > { %2842 = vmatprep.subr.bf16.mxu0 %v2841_v59 }
 0x28c   : > { %2844 = vmatpush3.bf16.msra.mxu0 %v2841_v59 }
 0x28f   : > { %2542 = vmatmul.mubr.f32.vlgmr.msra.gmra.mrb[16].mxu0 %v923_v60 }
 0x290   : > { %2544 = vmatprep.mubr.f32.mxu0 %v924_v61  ;;  %v2857_v61 = vpack.c.bf16 %v1071_v55, %v1070_v54  ;;  %v1201_v54 = vld [vmem:[#allocation7 + $0x118] sm:$0xff] }
 0x293   : > { %2545 = vmatmul.mubr.f32.gmra.mrb[18].mxu0 %v925_v62 }
 0x294   : > { %2547 = vmatprep.mubr.f32.mxu0 %v926_v63  ;;  %v1072_v63 = vld [vmem:[#allocation7 + $0xc0] sm:$0xff] }
 0x297   : > { %2548 = vmatmul.mubr.f32.gmra.mrb[20].mxu0 %v927_v0  ;;  %v1073_v0 = vld [vmem:[#allocation7 + $0xc8] sm:$0xff] }
 0x298   : > { %2550 = vmatprep.mubr.f32.mxu0 %v928_v1  ;;  %v2861_v3 = vpack.c.bf16 %v1073_v0, %v1072_v63  ;;  %v1207_v63 = vld [vmem:[#allocation7 + $0x148] sm:$0xff] }
 0x29b   : > { %2551 = vmatmul.mubr.f32.gmra.mrb[22].mxu0 %v929_v2 }
 0x342   : > { %v2455_v32 = vpop.f32.mrb[8].mxu0 }
 0x343   : > { %v755_v33 = vadd.f32 %v2455_v32, %v682_v31  ;;  %v749_v34 = vpop.f32.mrb[9].mxu0 }
 0x344   : > { %v750_v35 = vadd.f32 %v749_v34, %v682_v31 }
 0x345   : > { %v789_v40 = vmax.f32 %v755_v33, 0.0 }
 0x346   : > { %v788_v38 = vmax.f32 %v750_v35, 0.0  ;;  %v2458_v39 = vpop.f32.mrb[10].mxu0 }
 0x347   : > { %v765_v41 = vadd.f32 %v2458_v39, %v682_v31  ;;  %v759_v42 = vpop.f32.mrb[11].mxu0 }
 0x348   : > { %2497 = vmatprep.mubr.f32.mxu1 %v788_v38  ;;  %v760_v44 = vadd.f32 %v759_v42, %v682_v31 }
 0x349   : > { %v791_v47 = vmax.f32 %v765_v41, 0.0  ;;  %2498 = vmatmul.mubr.f32.vlgmr.msra.gmra.mrb[8].mxu1 %v789_v40 }
 0x34a   : > { %v790_v48 = vmax.f32 %v760_v44, 0.0  ;;  %2848 = vmatpush3.bf16.msra.mxu1 %v2845_v9  ;;  %v2461_v49 = vpop.f32.mrb[12].mxu0  ;;  %v1077_v9 = vld [vmem:[#allocation7 + $0xe8] sm:$0xff] }
 0x34b   : > { %v775_v50 = vadd.f32 %v2461_v49, %v682_v31  ;;  %2850 = vmatprep.subr.bf16.mxu1 %v2849_v43  ;;  %v769_v51 = vpop.f32.mrb[13].mxu0  ;;  %v2869_v11 = vpack.c.bf16 %v1077_v9, %v1076_v7  ;;  %v1212_v7 = vld [vmem:[#allocation7 + $0x170] sm:$0xff]  ;;  %v1213_v9 = vld [vmem:[#allocation7 + $0x178] sm:$0xff] }
 0x34c   : > { %v770_v53 = vadd.f32 %v769_v51, %v682_v31  ;;  %2500 = vmatprep.mubr.f32.mxu1 %v790_v48  ;;  %v1199_v51 = vld [vmem:[#allocation7 + $0x108] sm:$0xff] }
 0x34d   : > { %v793_v56 = vmax.f32 %v775_v50, 0.0  ;;  %2501 = vmatmul.mubr.f32.gmra.mrb[10].mxu1 %v791_v47  ;;  %v1198_v50 = vld [vmem:[#allocation7 + $0x100] sm:$0xff] }
 0x34e   : > { %v792_v57 = vmax.f32 %v770_v53, 0.0  ;;  %2852 = vmatpush3.bf16.msra.mxu1 %v2849_v43  ;;  %v2464_v58 = vpop.f32.mrb[14].mxu0  ;;  %v1200_v53 = vld [vmem:[#allocation7 + $0x110] sm:$0xff] }
 0x34f   : > { %v785_v59 = vadd.f32 %v2464_v58, %v682_v31  ;;  %2854 = vmatprep.subr.bf16.mxu1 %v2853_v52  ;;  %v779_v60 = vpop.f32.mrb[15].mxu0  ;;  %v2881_v55 = vpack.c.bf16 %v1201_v54, %v1200_v53 }
 0x350   : > { %v780_v62 = vadd.f32 %v779_v60, %v682_v31  ;;  %2503 = vmatprep.mubr.f32.mxu1 %v792_v57  ;;  %v1203_v57 = vld [vmem:[#allocation7 + $0x128] sm:$0xff]  ;;  %v1205_v60 = vld [vmem:[#allocation7 + $0x138] sm:$0xff] }
 0x351   : > { %v795_v1 = vmax.f32 %v785_v59, 0.0  ;;  %2504 = vmatmul.mubr.f32.gmra.mrb[12].mxu1 %v793_v56  ;;  %v1202_v56 = vld [vmem:[#allocation7 + $0x120] sm:$0xff]  ;;  %v1204_v59 = vld [vmem:[#allocation7 + $0x130] sm:$0xff] }
 0x352   : > { %v794_v2 = vmax.f32 %v780_v62, 0.0  ;;  %2856 = vmatpush3.bf16.msra.mxu1 %v2853_v52  ;;  %v2877_v52 = vpack.c.bf16 %v1199_v51, %v1198_v50  ;;  %v2885_v58 = vpack.c.bf16 %v1203_v57, %v1202_v56  ;;  %v1206_v62 = vld [vmem:[#allocation7 + $0x140] sm:$0xff]  ;;  %v1083_v51 = vrot.slane %v3575_v18, %v3527_v8 }
 0x353   : > { %2858 = vmatprep.subr.bf16.mxu1 %v2857_v61  ;;  %v2893_v0 = vpack.c.bf16 %v1207_v63, %v1206_v62 }
 0x354   : > { %2506 = vmatprep.mubr.f32.mxu1 %v794_v2  ;;  %2878 = vmatprep.subr.bf16.mxu0 %v2877_v52  ;;  %v1209_v2 = vld [vmem:[#allocation7 + $0x158] sm:$0xff] }
 0x355   : > { %2507 = vmatmul.mubr.f32.gmra.mrb[14].mxu1 %v795_v1  ;;  %2880 = vmatpush3.bf16.msra.mxu0 %v2877_v52  ;;  %v1208_v1 = vld [vmem:[#allocation7 + $0x150] sm:$0xff] }
 0x356   : > { %2860 = vmatpush3.bf16.msra.mxu1 %v2857_v61  ;;  %2882 = vmatprep.subr.bf16.mxu0 %v2881_v55  ;;  %v2889_v61 = vpack.c.bf16 %v1205_v60, %v1204_v59 }
 0x357   : > { %2862 = vmatprep.subr.bf16.mxu1 %v2861_v3 }
 0x359   : > { %2884 = vmatpush3.bf16.msra.mxu0 %v2881_v55 }
 0x35a   : > { %2864 = vmatpush3.bf16.msra.mxu1 %v2861_v3  ;;  %2886 = vmatprep.subr.bf16.mxu0 %v2885_v58  ;;  %v2897_v3 = vpack.c.bf16 %v1209_v2, %v1208_v1 }
 0x35b   : > { %2866 = vmatprep.subr.bf16.mxu1 %v2865_v6 }
 0x35d   : > { %2888 = vmatpush3.bf16.msra.mxu0 %v2885_v58 }
 0x35e   : > { %2868 = vmatpush3.bf16.msra.mxu1 %v2865_v6  ;;  %2890 = vmatprep.subr.bf16.mxu0 %v2889_v61  ;;  %v2901_v6 = vpack.c.bf16 %v1211_v5, %v1210_v4 }
 0x35f   : > { %2870 = vmatprep.subr.bf16.mxu1 %v2869_v11 }
 0x361   : > { %2892 = vmatpush3.bf16.msra.mxu0 %v2889_v61 }
 0x362   : > { %v2543_v23 = vpop.f32.mrb[16].mxu0  ;;  %2872 = vmatpush3.bf16.msra.mxu1 %v2869_v11  ;;  %2894 = vmatprep.subr.bf16.mxu0 %v2893_v0  ;;  %v2905_v11 = vpack.c.bf16 %v1213_v9, %v1212_v7 }
 0x363   : > { %v1022_v25 = vadd.f32 %v2543_v23, %v949_v21  ;;  %v1016_v27 = vpop.f32.mrb[17].mxu0  ;;  %2874 = vmatprep.subr.bf16.mxu1 %v2873_v22  ;;  %v1335_v23 = vld [vmem:[#allocation7 + $0x198] sm:$0xff] }
 0x364   : > { %v1017_v28 = vadd.f32 %v1016_v27, %v949_v21  ;;  %v1336_v27 = vld [vmem:[#allocation7 + $0x1a0] sm:$0xff] }
 0x365   : > { %v1056_v32 = vmax.f32 %v1022_v25, 0.0  ;;  %2896 = vmatpush3.bf16.msra.mxu0 %v2893_v0 }
 0x366   : > { %v1055_v30 = vmax.f32 %v1017_v28, 0.0  ;;  %v2546_v31 = vpop.f32.mrb[18].mxu0  ;;  %2876 = vmatpush3.bf16.msra.mxu1 %v2873_v22  ;;  %2898 = vmatprep.subr.bf16.mxu0 %v2897_v3  ;;  %v2909_v22 = vpack.c.bf16 %v1333_v20, %v1332_v19  ;;  %v1337_v28 = vld [vmem:[#allocation7 + $0x1a8] sm:$0xff] }
 0x367   : > { %v1032_v33 = vadd.f32 %v2546_v31, %v949_v21  ;;  %v1026_v34 = vpop.f32.mrb[19].mxu0  ;;  %v1338_v31 = vld [vmem:[#allocation7 + $0x1b0] sm:$0xff] }
 0x368   : > { %v1027_v35 = vadd.f32 %v1026_v34, %v949_v21  ;;  %2585 = vmatprep.mubr.f32.mxu1 %v1055_v30  ;;  %2910 = vmatprep.subr.bf16.mxu1 %v2909_v22  ;;  %v2917_v30 = vpack.c.bf16 %v1337_v28, %v1336_v27  ;;  %v1340_v34 = vld [vmem:[#allocation7 + $0x1c0] sm:$0xff] }
 0x369   : > { %v1058_v36 = vmax.f32 %v1032_v33, 0.0  ;;  %2586 = vmatmul.mubr.f32.vlgmr.msra.gmra.mrb[16].mxu1 %v1056_v32  ;;  %2900 = vmatpush3.bf16.msra.mxu0 %v2897_v3  ;;  %v1339_v32 = vld [vmem:[#allocation7 + $0x1b8] sm:$0xff] }
 0x36a   : > { %v1057_v37 = vmax.f32 %v1027_v35, 0.0  ;;  %v2549_v38 = vpop.f32.mrb[20].mxu0  ;;  %2902 = vmatprep.subr.bf16.mxu0 %v2901_v6  ;;  %2912 = vmatpush3.bf16.msra.mxu1 %v2909_v22  ;;  %v2921_v33 = vpack.c.bf16 %v1339_v32, %v1338_v31  ;;  %v1341_v35 = vld [vmem:[#allocation7 + $0x1c8] sm:$0xff]  ;;  %v1347_v22 = vld [vmem:[#allocation7 + $0x1f8] sm:$0xff] }
 0x36b   : > { %v1042_v39 = vadd.f32 %v2549_v38, %v949_v21  ;;  %v1036_v40 = vpop.f32.mrb[21].mxu0  ;;  %v1343_v38 = vld [vmem:[#allocation7 + $0x1d8] sm:$0xff] }
 0x36c   : > { %v1037_v41 = vadd.f32 %v1036_v40, %v949_v21  ;;  %2588 = vmatprep.mubr.f32.mxu1 %v1057_v37  ;;  %v1342_v37 = vld [vmem:[#allocation7 + $0x1d0] sm:$0xff]  ;;  %v1344_v40 = vld [vmem:[#allocation7 + $0x1e0] sm:$0xff] }
 0x36d   : > { %v1060_v42 = vmax.f32 %v1042_v39, 0.0  ;;  %2589 = vmatmul.mubr.f32.gmra.mrb[18].mxu1 %v1058_v36  ;;  %2904 = vmatpush3.bf16.msra.mxu0 %v2901_v6  ;;  %v2925_v36 = vpack.c.bf16 %v1341_v35, %v1340_v34  ;;  %v2929_v39 = vpack.c.bf16 %v1343_v38, %v1342_v37 }
 0x36e   : > { %v1059_v43 = vmax.f32 %v1037_v41, 0.0  ;;  %v2552_v44 = vpop.f32.mrb[22].mxu0  ;;  %2906 = vmatprep.subr.bf16.mxu0 %v2905_v11  ;;  %v1345_v41 = vld [vmem:[#allocation7 + $0x1e8] sm:$0xff] }
 0x36f   : > { %v1052_v45 = vadd.f32 %v2552_v44, %v949_v21  ;;  %v1046_v46 = vpop.f32.mrb[23].mxu0 }
 0x370   : > { %v1047_v47 = vadd.f32 %v1046_v46, %v949_v21  ;;  %2591 = vmatprep.mubr.f32.mxu1 %v1059_v43  ;;  %v1334_v21 = vld [vmem:[#allocation7 + $0x190] sm:$0xff] }
 0x371   : > { %v1062_v48 = vmax.f32 %v1052_v45, 0.0  ;;  %2592 = vmatmul.mubr.f32.gmra.mrb[20].mxu1 %v1060_v42  ;;  %2908 = vmatpush3.bf16.msra.mxu0 %v2905_v11  ;;  %v2913_v25 = vpack.c.bf16 %v1335_v23, %v1334_v21  ;;  %v2933_v42 = vpack.c.bf16 %v1345_v41, %v1344_v40  ;;  %v1346_v21 = vld [vmem:[#allocation7 + $0x1f0] sm:$0xff] }
 0x372   : > { %v1061_v49 = vmax.f32 %v1047_v47, 0.0  ;;  %v2937_v23 = vpack.c.bf16 %v1347_v22, %v1346_v21 }
 0x373   : > { %2914 = vmatprep.subr.bf16.mxu1 %v2913_v25 }
 0x374   : > { %2594 = vmatprep.mubr.f32.mxu1 %v1061_v49  ;;  %2916 = vmatpush3.bf16.msra.mxu1 %v2913_v25  ;;  %v1217_v25 = vrot.slane %v3575_v18, %v3544_v12 }
 0x375   : > { %2595 = vmatmul.mubr.f32.gmra.mrb[22].mxu1 %v1062_v48  ;;  %2918 = vmatprep.subr.bf16.mxu1 %v2917_v30 }
 0x378   : > { %2920 = vmatpush3.bf16.msra.mxu1 %v2917_v30 }
 0x379   : > { %2922 = vmatprep.subr.bf16.mxu1 %v2921_v33 }
 0x37c   : > { %2924 = vmatpush3.bf16.msra.mxu1 %v2921_v33 }
 0x37d   : > { %2926 = vmatprep.subr.bf16.mxu1 %v2925_v36 }
 0x380   : > { %2928 = vmatpush3.bf16.msra.mxu1 %v2925_v36 }
 0x381   : > { %2930 = vmatprep.subr.bf16.mxu1 %v2929_v39 }
 0x384   : > { %2932 = vmatpush3.bf16.msra.mxu1 %v2929_v39 }
 0x385   : > { %2934 = vmatprep.subr.bf16.mxu1 %v2933_v42 }
 0x388   : > { %2936 = vmatpush3.bf16.msra.mxu1 %v2933_v42 }
 0x389   : > { %2938 = vmatprep.subr.bf16.mxu1 %v2937_v23 }
 0x38c   : > { %2940 = vmatpush3.bf16.msra.mxu1 %v2937_v23 }
 0x41c   : > { %v3579_v43 = vpop.f32.mrb[8].mxu1 }
 0x41d   : > { %v3581_v44 = vpop.f32.mrb[9].mxu1 }
 0x420   : > { %v3583_v45 = vpop.f32.mrb[10].mxu1 }
 0x421   : > { %v3585_v46 = vpop.f32.mrb[11].mxu1 }
 0x424   : > { %v3587_v47 = vpop.f32.mrb[12].mxu1 }
 0x425   : > { %v3589_v48 = vpop.f32.mrb[13].mxu1 }
 0x428   : > { %v3591_v49 = vpop.f32.mrb[14].mxu1 }
 0x429   : > { %v3593_v50 = vpop.f32.mrb[15].mxu1 }
 0x43c   : > { %v2587_v52 = vpop.f32.mrb[16].mxu1 }
 0x43d   : > { %v1156_v53 = vadd.f32 %v2587_v52, %v1083_v51  ;;  %v1150_v54 = vpop.f32.mrb[17].mxu1 }
 0x43e   : > { %v1151_v55 = vadd.f32 %v1150_v54, %v1083_v51 }
 0x43f   : > { %v1190_v58 = vmax.f32 %v1156_v53, 0.0 }
 0x440   : > { %v1189_v56 = vmax.f32 %v1151_v55, 0.0  ;;  %v2590_v57 = vpop.f32.mrb[18].mxu1 }
 0x441   : > { %v1166_v59 = vadd.f32 %v2590_v57, %v1083_v51  ;;  %v1160_v60 = vpop.f32.mrb[19].mxu1 }
 0x442   : > { %v1161_v61 = vadd.f32 %v1160_v60, %v1083_v51  ;;  %2629 = vmatprep.mubr.f32.mxu0 %v1189_v56  ;;  %v1472_v60 = vpop.permute.xlu1 %1471 }
 0x443   : > { %2630 = vmatmul.mubr.f32.vlgmr.msra.gmra.mrb[24].mxu0 %v1190_v58  ;;  %v1192_v0 = vmax.f32 %v1166_v59, 0.0 }
 0x444   : > { %v1191_v62 = vmax.f32 %v1161_v61, 0.0  ;;  %v2593_v63 = vpop.f32.mrb[20].mxu1  ;;  %v816_v61 = vrot.slane %v3509_v16, %v3554_v13 }
 0x445   : > { %v1176_v1 = vadd.f32 %v2593_v63, %v1083_v51  ;;  %v1170_v2 = vpop.f32.mrb[21].mxu1  ;;  %v3601_v63 = vpop.permute.xlu0 %1581 }
 0x446   : > { %v1171_v3 = vadd.f32 %v1170_v2, %v1083_v51  ;;  %2632 = vmatprep.mubr.f32.mxu0 %v1191_v62  ;;  %v1479_v62 = vpop.permute.xlu1 %1478  ;;  %v909_v16 = vadd.f32 %v3587_v47, %v816_v61 }
 0x447   : > { %v1194_v4 = vmax.f32 %v1176_v1, 0.0  ;;  %2633 = vmatmul.mubr.f32.gmra.mrb[26].mxu0 %v1192_v0  ;;  %v889_v0 = vadd.f32 %v3579_v43, %v816_v61  ;;  %v884_v1 = vadd.f32 %v3581_v44, %v816_v61  ;;  %v904_v43 = vadd.f32 %v3589_v48, %v816_v61 }
 0x448   : > { %v1193_v5 = vmax.f32 %v1171_v3, 0.0  ;;  %v2596_v6 = vpop.f32.mrb[22].mxu1 }
 0x449   : > { %v1186_v7 = vadd.f32 %v2596_v6, %v1083_v51  ;;  %v1180_v9 = vpop.f32.mrb[23].mxu1  ;;  %v1486_v3 = vpop.permute.xlu0 %1485  ;;  %v899_v6 = vadd.f32 %v3583_v45, %v816_v61 }
 0x44a   : > { %v1181_v11 = vadd.f32 %v1180_v9, %v1083_v51  ;;  %2635 = vmatprep.mubr.f32.mxu0 %v1193_v5  ;;  %v1493_v2 = vpop.permute.xlu1 %1492  ;;  %v1523_v5 = vmul.f32 %v1479_v62, %v889_v0 }
 0x44b   : > { %v1196_v19 = vmax.f32 %v1186_v7, 0.0  ;;  %2636 = vmatmul.mubr.f32.gmra.mrb[28].mxu0 %v1194_v4  ;;  %v1522_v4 = vmul.f32 %v1472_v60, %v884_v1  ;;  %v894_v7 = vadd.f32 %v3585_v46, %v816_v61  ;;  %v914_v46 = vadd.f32 %v3593_v50, %v816_v61 }
 0x44c   : > { %v1195_v20 = vmax.f32 %v1181_v11, 0.0  ;;  %v1536_v11 = vrot.slane %v1523_v5, 4 }
 0x44d   : > { %v1530_v9 = vrot.slane %v1522_v4, 4  ;;  %v1500_v21 = vpop.permute.xlu0 %1499  ;;  %v1524_v22 = vmul.f32 %v1486_v3, %v894_v7 }
 0x44e   : > { %2638 = vmatprep.mubr.f32.mxu0 %v1195_v20  ;;  %v1525_v20 = vmul.f32 %v1493_v2, %v899_v6  ;;  %v1537_v44 = vadd.f32 %v1536_v11, %v1523_v5  ;;  %v1526_v45 = vmul.f32 %v1500_v21, %v904_v43  ;;  %v1589_v6 = vrot.slane %v3601_v63, 7 }
 0x44f   : > { %2639 = vmatmul.mubr.f32.gmra.mrb[30].mxu0 %v1196_v19  ;;  %v1507_v19 = vpop.permute.xlu1 %1506  ;;  %v1531_v23 = vadd.f32 %v1530_v9, %v1522_v4  ;;  %v1351_v43 = vrot.slane %v3575_v18, %v3554_v13 }
 0x450   : > { %v1538_v47 = vrot.slane %v1537_v44, 2 }
 0x516   : > { %v2631_v27 = vpop.f32.mrb[24].mxu0 }
 0x517   : > { %v1290_v28 = vadd.f32 %v2631_v27, %v1217_v25  ;;  %v1284_v30 = vpop.f32.mrb[25].mxu0  ;;  %v1527_v27 = vmul.f32 %v1507_v19, %v909_v16 }
 0x518   : > { %v1285_v31 = vadd.f32 %v1284_v30, %v1217_v25  ;;  %v1542_v30 = vrot.slane %v1524_v22, 4 }
 0x519   : > { %v1324_v34 = vmax.f32 %v1290_v28, 0.0  ;;  %v919_v28 = vadd.f32 %v3591_v49, %v816_v61 }
 0x51a   : > { %v1323_v32 = vmax.f32 %v1285_v31, 0.0  ;;  %v2634_v33 = vpop.f32.mrb[26].mxu0  ;;  %v1521_v31 = vpop.permute.xlu1 %1520  ;;  %v1543_v48 = vadd.f32 %v1542_v30, %v1524_v22 }
 0x51b   : > { %v1300_v35 = vadd.f32 %v2634_v33, %v1217_v25  ;;  %v1294_v36 = vpop.f32.mrb[27].mxu0  ;;  %v1514_v33 = vpop.permute.xlu0 %1513 }
 0x51c   : > { %v1295_v37 = vadd.f32 %v1294_v36, %v1217_v25  ;;  %2673 = vmatprep.mubr.f32.mxu1 %v1323_v32  ;;  %v1583_v32 = vrot.slane %v3601_v63, 1  ;;  %v1560_v36 = vrot.slane %v1527_v27, 4 }
 0x51d   : > { %2674 = vmatmul.mubr.f32.vlgmr.msra.gmra.mrb[24].mxu1 %v1324_v34  ;;  %v1326_v40 = vmax.f32 %v1300_v35, 0.0  ;;  %v1532_v34 = vrot.slane %v1531_v23, 2 }
 0x51e   : > { %v1325_v38 = vmax.f32 %v1295_v37, 0.0  ;;  %v2637_v39 = vpop.f32.mrb[28].mxu0  ;;  %v1529_v37 = vmul.f32 %v1521_v31, %v919_v28  ;;  %3012 = vrcp.f32 %v1583_v32 }
 0x51f   : > { %v1310_v41 = vadd.f32 %v2637_v39, %v1217_v25  ;;  %v1304_v42 = vpop.f32.mrb[29].mxu0  ;;  %v1528_v39 = vmul.f32 %v1514_v33, %v914_v46  ;;  %3014 = vrcp.f32 %v3601_v63  ;;  %v1533_v49 = vadd.f32 %v1532_v34, %v1531_v23 }
 0x520   : > { %v1305_v51 = vadd.f32 %v1304_v42, %v1217_v25  ;;  %2676 = vmatprep.mubr.f32.mxu1 %v1325_v38  ;;  %v1554_v38 = vrot.slane %v1526_v45, 4  ;;  %v1561_v42 = vadd.f32 %v1560_v36, %v1527_v27 }
 0x521   : > { %2677 = vmatmul.mubr.f32.gmra.mrb[26].mxu1 %v1326_v40  ;;  %v1328_v54 = vmax.f32 %v1310_v41, 0.0  ;;  %v1539_v40 = vadd.f32 %v1538_v47, %v1537_v44  ;;  %v1585_v41 = vrot.slane %v3601_v63, 3 }
 0x522   : > { %v1327_v52 = vmax.f32 %v1305_v51, 0.0  ;;  %v2640_v53 = vpop.f32.mrb[30].mxu0  ;;  %v1572_v51 = vrot.slane %v1529_v37, 4  ;;  %v1562_v61 = vrot.slane %v1561_v42, 2 }
 0x523   : > { %v1320_v55 = vadd.f32 %v2640_v53, %v1217_v25  ;;  %v1314_v56 = vpop.f32.mrb[31].mxu0  ;;  %v1544_v53 = vrot.slane %v1543_v48, 2  ;;  %3016 = vrcp.f32 %v1585_v41 }
 0x524   : > { %v1315_v57 = vadd.f32 %v1314_v56, %v1217_v25  ;;  %2679 = vmatprep.mubr.f32.mxu1 %v1327_v52  ;;  %v1548_v25 = vrot.slane %v1525_v20, 4  ;;  %v1584_v52 = vrot.slane %v3601_v63, 2  ;;  %v1586_v56 = vrot.slane %v3601_v63, 4 }
 0x525   : > { %2680 = vmatmul.mubr.f32.gmra.mrb[28].mxu1 %v1328_v54  ;;  %v1330_v59 = vmax.f32 %v1320_v55, 0.0  ;;  %v1555_v54 = vadd.f32 %v1554_v38, %v1526_v45  ;;  %v1566_v55 = vrot.slane %v1528_v39, 4  ;;  %v1573_v62 = vadd.f32 %v1572_v51, %v1529_v37 }
 0x526   : > { %v1329_v58 = vmax.f32 %v1315_v57, 0.0  ;;  %v1549_v35 = vadd.f32 %v1548_v25, %v1525_v20  ;;  %v1534_v57 = vrot.slane %v1533_v49, 1  ;;  %3018 = vrcp.f32 %v1584_v52 }
 0x527   : > { %v1545_v0 = vadd.f32 %v1544_v53, %v1543_v48  ;;  %v1556_v1 = vrot.slane %v1555_v54, 2  ;;  %v1567_v2 = vadd.f32 %v1566_v55, %v1528_v39  ;;  %3020 = vrcp.f32 %v1586_v56 }
 0x528   : > { %2682 = vmatprep.mubr.f32.mxu1 %v1329_v58  ;;  %v1550_v50 = vrot.slane %v1549_v35, 2  ;;  %v1540_v58 = vrot.slane %v1539_v40, 1  ;;  %v3013_v3 = vpop.eup %3012  ;;  %v1535_v5 = vadd.f32 %v1534_v57, %v1533_v49  ;;  %v1563_v11 = vadd.f32 %v1562_v61, %v1561_v42 }
 0x529   : > { %2683 = vmatmul.mubr.f32.gmra.mrb[30].mxu1 %v1330_v59  ;;  %v1587_v59 = vrot.slane %v3601_v63, 5  ;;  %v3015_v7 = vpop.eup %3014  ;;  %v1574_v19 = vrot.slane %v1573_v62, 2  ;;  %v1588_v20 = vrot.slane %v3601_v63, 6  ;;  %v1546_v16 = vrot.slane %v1545_v0, 1 }
 0x52a   : > { %v1551_v60 = vadd.f32 %v1550_v50, %v1549_v35  ;;  %v1541_v4 = vadd.f32 %v1540_v58, %v1539_v40  ;;  %v1557_v21 = vadd.f32 %v1556_v1, %v1555_v54  ;;  %v1568_v22 = vrot.slane %v1567_v2, 2 }
 0x52b   : > { %3022 = vrcp.f32 %v1587_v59  ;;  %v1599_v44 = vmul.f32 %v3015_v7, %v1535_v5  ;;  %v1564_v27 = vrot.slane %v1563_v11, 1  ;;  %v1575_v28 = vadd.f32 %v1574_v19, %v1573_v62 }
 0x52c   : > { %v1552_v9 = vrot.slane %v1551_v60, 1  ;;  %v1601_v23 = vmul.f32 %v3013_v3, %v1541_v4  ;;  %3024 = vrcp.f32 %v1589_v6  ;;  %v1547_v45 = vadd.f32 %v1546_v16, %v1545_v0 }
 0x52d   : > { %3026 = vrcp.f32 %v1588_v20  ;;  %v3017_v30 = vpop.eup %3016  ;;  %v1558_v46 = vrot.slane %v1557_v21, 1  ;;  %v1569_v31 = vadd.f32 %v1568_v22, %v1567_v2  ;;  %v1617_v34 = vrot.slane %v1599_v44, %v3504_v15 }
 0x52e   : > { %v1553_v25 = vadd.f32 %v1552_v9, %v1551_v60  ;;  %v1621_v63 = vrot.slane %v1601_v23, %v3504_v15  ;;  %v1565_v35 = vadd.f32 %v1564_v27, %v1563_v11  ;;  %v1576_v18 = vrot.slane %v1575_v28, 1 }
 0x52f   : > { %v1559_v39 = vadd.f32 %v1558_v46, %v1557_v21  ;;  %v1570_v49 = vrot.slane %v1569_v31, 1 }
 0x530   : > { %v3019_v32 = vpop.eup %3018  ;;  %v1605_v48 = vmul.f32 %v3017_v30, %v1553_v25  ;;  %v1577_v52 = vadd.f32 %v1576_v18, %v1575_v28 }
 0x531   : > { %v3021_v47 = vpop.eup %3020  ;;  %v1603_v41 = vmul.f32 %v3019_v32, %v1547_v45  ;;  %v1571_v58 = vadd.f32 %v1570_v49, %v1569_v31  ;;  %v3631_v45 = vsub.s32 %v3541_v10, %v3501_v14 }
 0x532   : > { %v1629_v55 = vrot.slane %v1605_v48, %v3504_v15  ;;  %v1607_v60 = vmul.f32 %v3021_v47, %v1559_v39 }
 0x533   : > { %v1625_v61 = vrot.slane %v1603_v41, %v3504_v15 }
 0x534   : > { %v1633_v9 = vrot.slane %v1607_v60, %v3504_v15 }
 0x535   : > { %v3023_v38 = vpop.eup %3022 }
 0x536   : > { %v1609_v56 = vmul.f32 %v3023_v38, %v1565_v35  ;;  %v3025_v57 = vpop.eup %3024 }
 0x537   : > { %v3027_v62 = vpop.eup %3026  ;;  %v1613_v6 = vmul.f32 %v3025_v57, %v1577_v52 }
 0x538   : > { %v1637_v5 = vrot.slane %v1609_v56, %v3504_v15  ;;  %v1611_v11 = vmul.f32 %v3027_v62, %v1571_v58 }
 0x539   : > { %v1645_v23 = vrot.slane %v1613_v6, %v3504_v15 }
 0x53a   : > { %v1641_v25 = vrot.slane %v1611_v11, %v3504_v15 }
 0x5f0   : > { %v2675_v33 = vpop.f32.mrb[24].mxu1 }
 0x5f1   : > { %v1424_v36 = vadd.f32 %v2675_v33, %v1351_v43  ;;  %v1418_v37 = vpop.f32.mrb[25].mxu1 }
 0x5f2   : > { %v1419_v40 = vadd.f32 %v1418_v37, %v1351_v43 }
 0x5f3   : > { %v1647_v50 = vmul.f32 %v1621_v63, %v1424_v36 }
 0x5f4   : > { %v2678_v42 = vpop.f32.mrb[26].mxu1  ;;  %v1646_v51 = vmul.f32 %v1617_v34, %v1419_v40 }
 0x5f5   : > { %v1434_v53 = vadd.f32 %v2678_v42, %v1351_v43  ;;  %1656 = vadd.xlane.f32.xlu1 %v1647_v50  ;;  %v1428_v54 = vpop.f32.mrb[27].mxu1 }
 0x5f6   : > { %v1429_v59 = vadd.f32 %v1428_v54, %v1351_v43  ;;  %1654 = vadd.xlane.f32.xlu0 %v1646_v51 }
 0x5f7   : > { %v1649_v0 = vmul.f32 %v1629_v55, %v1434_v53 }
 0x5f8   : > { %v2681_v1 = vpop.f32.mrb[28].mxu1  ;;  %v1648_v2 = vmul.f32 %v1625_v61, %v1429_v59 }
 0x5f9   : > { %v1444_v3 = vadd.f32 %v2681_v1, %v1351_v43  ;;  %v1438_v4 = vpop.f32.mrb[29].mxu1 }
 0x5fa   : > { %v1439_v7 = vadd.f32 %v1438_v4, %v1351_v43  ;;  %1660 = vadd.xlane.f32.xlu0 %v1649_v0 }
 0x5fb   : > { %v1651_v19 = vmul.f32 %v1637_v5, %v1444_v3 }
 0x5fc   : > { %v2684_v20 = vpop.f32.mrb[30].mxu1  ;;  %v1650_v16 = vmul.f32 %v1633_v9, %v1439_v7 }
 0x5fd   : > { %v1454_v21 = vadd.f32 %v2684_v20, %v1351_v43  ;;  %v1448_v22 = vpop.f32.mrb[31].mxu1 }
 0x5fe   : > { %v1449_v44 = vadd.f32 %v1448_v22, %v1351_v43  ;;  %1662 = vadd.xlane.f32.xlu1 %v1650_v16  ;;  %1658 = vadd.xlane.f32.xlu0 %v1648_v2 }
 0x5ff   : > { %v1653_v27 = vmul.f32 %v1645_v23, %v1454_v21 }
 0x600   : > { %v1652_v28 = vmul.f32 %v1641_v25, %v1449_v44 }
 0x602   : > { %1666 = vadd.xlane.f32.xlu1 %v1652_v28  ;;  %1664 = vadd.xlane.f32.xlu0 %v1651_v19 }
 0x606   : > { %1668 = vadd.xlane.f32.xlu0 %v1653_v27 }
 0x682   : > { %v1657_v46 = vpop.xlane.xlu1 %1656 }
 0x683   : > { %v1655_v30 = vpop.xlane.xlu0 %1654  ;;  %v1685_v32 = vrot.slane %v1657_v46, %v3631_v45 }
 0x684   : > { %v1681_v43 = vrot.slane %v1655_v30, %v3631_v45 }
 0x686   : > { %v1711_v47 = vsel %vm1710_vm1, %v1685_v32, %v1681_v43 }
 0x687   : > { %v1661_v31 = vpop.xlane.xlu0 %1660 }
 0x688   : > { %v1693_v35 = vrot.slane %v1661_v31, %v3631_v45 }
 0x68b   : > { %v1663_v33 = vpop.xlane.xlu1 %1662  ;;  %v1659_v63 = vpop.xlane.xlu0 %1658 }
 0x68c   : > { %v1689_v34 = vrot.slane %v1659_v63, %v3631_v45  ;;  %v1697_v14 = vrot.slane %v1663_v33, %v3631_v45 }
 0x68e   : > { %v1713_v10 = vsel %vm1712_vm2, %v1689_v34, %v1711_v47 }
 0x68f   : > { %v1715_v18 = vsel %vm1714_vm3, %v1693_v35, %v1713_v10  ;;  %v1667_v36 = vpop.xlane.xlu1 %1666  ;;  %v1665_v37 = vpop.xlane.xlu0 %1664 }
 0x690   : > { %v1701_v48 = vrot.slane %v1665_v37, %v3631_v45  ;;  %v1717_v38 = vsel %vm1716_vm4, %v1697_v14, %v1715_v18  ;;  %v1705_v39 = vrot.slane %v1667_v36, %v3631_v45 }
 0x692   : > { %v1719_v49 = vsel %vm1718_vm5, %v1701_v48, %v1717_v38 }
 0x693   : > { %v1669_v40 = vpop.xlane.xlu0 %1668  ;;  %v1721_v50 = vsel %vm1720_vm6, %v1705_v39, %v1719_v49 }
 0x694   : > { %v1709_v41 = vrot.slane %v1669_v40, %v3631_v45 }
 0x696   : > { %v1723_v42 = vsel %vm1722_vm7, %v1709_v41, %v1721_v50 }
 0x697   : > { %v1726_v51 = vsel %vm1725_vm8, %v1723_v42, -inf }
 0x698   : > { %1727 = vmax.xlane.f32.xlu1 %v1726_v51 }
 0x725   : > { %v1728_v52 = vpop.xlane.xlu1 %1727 }
 0x726   : > { %v1733_v53 = vrot.slane %v1728_v52, %v3504_v15  ;;  %v1737_v54 = vrot.slane %v1728_v52, %v3527_v8  ;;  %v1741_v55 = vrot.slane %v1728_v52, %v3544_v12  ;;  %v1745_v56 = vrot.slane %v1728_v52, %v3554_v13 }
 0x727   : > { %v1753_v57 = vrot.slane %v1728_v52, %v3562_v26  ;;  %v1749_v61 = vrot.slane %v1728_v52, %v3548_v17  ;;  %v1761_v2 = vrot.slane %v1728_v52, %v3567_v29  ;;  %v1757_v5 = vrot.slane %v1728_v52, %v3558_v24 }
 0x728   : > { %v1770_v58 = vsub.f32 %v1655_v30, %v1733_v53  ;;  %v1771_v59 = vsub.f32 %v1657_v46, %v1737_v54  ;;  %v1773_v60 = vsub.f32 %v1661_v31, %v1745_v56  ;;  %v1772_v62 = vsub.f32 %v1659_v63, %v1741_v55 }
 0x729   : > { %v1775_v3 = vsub.f32 %v1665_v37, %v1753_v57  ;;  %v1774_v6 = vsub.f32 %v1663_v33, %v1749_v61  ;;  %v1777_v9 = vsub.f32 %v1669_v40, %v1761_v2  ;;  %v1776_v19 = vsub.f32 %v1667_v36, %v1757_v5 }
 0x72a   : > { %v1778_v0 = vmul.f32 1.442695, %v1770_v58  ;;  %v1780_v1 = vmul.f32 1.442695, %v1771_v59  ;;  %v1784_v4 = vmul.f32 1.442695, %v1773_v60 }
 0x72b   : > { %v1782_v7 = vmul.f32 1.442695, %v1772_v62  ;;  %v1788_v11 = vmul.f32 1.442695, %v1775_v3  ;;  %v1786_v20 = vmul.f32 1.442695, %v1774_v6 }
 0x72c   : > { %3028 = vpow2.f32 %v1778_v0  ;;  %v1792_v16 = vmul.f32 1.442695, %v1777_v9  ;;  %v1790_v21 = vmul.f32 1.442695, %v1776_v19 }
 0x72d   : > { %3030 = vpow2.f32 %v1780_v1 }
 0x72e   : > { %3032 = vpow2.f32 %v1784_v4 }
 0x72f   : > { %3034 = vpow2.f32 %v1782_v7 }
 0x730   : > { %3036 = vpow2.f32 %v1788_v11 }
 0x731   : > { %3038 = vpow2.f32 %v1786_v20 }
 0x732   : > { %3040 = vpow2.f32 %v1792_v16 }
 0x733   : > { %3042 = vpow2.f32 %v1790_v21 }
 0x736   : > { %v3029_v22 = vpop.eup %3028 }
 0x737   : > { %v3031_v23 = vpop.eup %3030  ;;  %1803 = vperm.xlu0 %3010, %v3029_v22  }
 0x738   : > { %1806 = vperm.xlu1 %3011, %v3031_v23   ;;  %v3657_v44 = vpop.eup %3032 }
 0x739   : > { %v3035_v25 = vpop.eup %3034 }
 0x73a   : > { %v3660_v27 = vpop.eup %3036 }
 0x73b   : > { %1812 = vperm.xlu0 %3010, %v3657_v44   ;;  %v3039_v28 = vpop.eup %3038 }
 0x73c   : > { %1809 = vperm.xlu1 %3011, %v3035_v25   ;;  %v3663_v30 = vpop.eup %3040 }
 0x73d   : > { %v3665_v46 = vpop.eup %3042 }
 0x73f   : > { %1818 = vperm.xlu0 %3010, %v3660_v27  }
 0x740   : > { %1815 = vperm.xlu1 %3011, %v3039_v28  }
 0x743   : > { %1824 = vperm.xlu0 %3010, %v3663_v30  }
 0x744   : > { %1821 = vperm.xlu1 %3011, %v3665_v46  }
 0x7b6   : > { %v1804_v31 = vpop.permute.xlu0 %1803 }
 0x7b7   : > { %v1807_v32 = vpop.permute.xlu1 %1806  ;;  %v1829_v33 = vrot.slane %v1804_v31, %v3631_v45 }
 0x7b8   : > { %v1833_v43 = vrot.slane %v1807_v32, %v3631_v45 }
 0x7ba   : > { %v1813_v63 = vpop.permute.xlu0 %1812  ;;  %v1858_v35 = vsel %vm1710_vm1, %v1833_v43, %v1829_v33 }
 0x7bb   : > { %v1810_v34 = vpop.permute.xlu1 %1809  ;;  %v1841_v14 = vrot.slane %v1813_v63, %v3631_v45 }
 0x7bc   : > { %v1837_v47 = vrot.slane %v1810_v34, %v3631_v45 }
 0x7be   : > { %v1859_v10 = vsel %vm1712_vm2, %v1837_v47, %v1858_v35  ;;  %v1819_v18 = vpop.permute.xlu0 %1818 }
 0x7bf   : > { %v1816_v36 = vpop.permute.xlu1 %1815  ;;  %v1860_v48 = vsel %vm1714_vm3, %v1841_v14, %v1859_v10  ;;  %v1849_v38 = vrot.slane %v1819_v18, %v3631_v45 }
 0x7c0   : > { %v1845_v37 = vrot.slane %v1816_v36, %v3631_v45 }
 0x7c2   : > { %v1861_v39 = vsel %vm1716_vm4, %v1845_v37, %v1860_v48  ;;  %v1825_v49 = vpop.permute.xlu0 %1824 }
 0x7c3   : > { %v1822_v40 = vpop.permute.xlu1 %1821  ;;  %v1857_v41 = vrot.slane %v1825_v49, %v3631_v45  ;;  %v1862_v42 = vsel %vm1718_vm5, %v1849_v38, %v1861_v39 }
 0x7c4   : > { %v1853_v50 = vrot.slane %v1822_v40, %v3631_v45 }
 0x7c6   : > { %v1863_v51 = vsel %vm1720_vm6, %v1853_v50, %v1862_v42 }
 0x7c7   : > { %v1864_v52 = vsel %vm1722_vm7, %v1857_v41, %v1863_v51 }
 0x7c8   : > { %v1866_v53 = vsel %vm1725_vm8, %v1864_v52, 0.0 }
 0x7c9   : > { %1867 = vadd.xlane.f32.xlu1 %v1866_v53 }
 0x856   : > { %v1868_v54 = vpop.xlane.xlu1 %1867 }
 0x857   : > { %v1873_v55 = vrot.slane %v1868_v54, %v3504_v15  ;;  %v1877_v56 = vrot.slane %v1868_v54, %v3527_v8  ;;  %v1881_v57 = vrot.slane %v1868_v54, %v3544_v12  ;;  %v1885_v58 = vrot.slane %v1868_v54, %v3554_v13 }
 0x858   : > { %v1889_v60 = vrot.slane %v1868_v54, %v3548_v17  ;;  %v1893_v0 = vrot.slane %v1868_v54, %v3562_v26  ;;  %v1897_v8 = vrot.slane %v1868_v54, %v3558_v24  ;;  %v1901_v13 = vrot.slane %v1868_v54, %v3567_v29 }
 0x859   : > { %3044 = vrcp.f32 %v1873_v55 }
 0x85a   : > { %3046 = vrcp.f32 %v1877_v56 }
 0x85b   : > { %3048 = vrcp.f32 %v1881_v57 }
 0x85c   : > { %3050 = vrcp.f32 %v1885_v58 }
 0x85d   : > { %3052 = vrcp.f32 %v1889_v60 }
 0x85e   : > { %3054 = vrcp.f32 %v1893_v0 }
 0x85f   : > { %3056 = vrcp.f32 %v1897_v8 }
 0x860   : > { %3058 = vrcp.f32 %v1901_v13 }
 0x863   : > { %v3045_v59 = vpop.eup %3044 }
 0x864   : > { %v1911_v61 = vmul.f32 %v3045_v59, %v3029_v22  ;;  %v3047_v62 = vpop.eup %3046 }
 0x865   : > { %v1913_v15 = vmul.f32 %v3047_v62, %v3031_v23  ;;  %v3049_v1 = vpop.eup %3048 }
 0x866   : > { %1935 = vperm.xlu0 %3010, %v1911_v61   ;;  %v1915_v12 = vmul.f32 %v3049_v1, %v3035_v25  ;;  %v3051_v2 = vpop.eup %3050 }
 0x867   : > { %v1917_v17 = vmul.f32 %v3051_v2, %v3657_v44  ;;  %v3053_v3 = vpop.eup %3052 }
 0x868   : > { %v1919_v4 = vmul.f32 %v3053_v3, %v3039_v28  ;;  %v3055_v5 = vpop.eup %3054 }
 0x869   : > { %v1921_v26 = vmul.f32 %v3055_v5, %v3660_v27  ;;  %v3057_v6 = vpop.eup %3056 }
 0x86a   : > { %1938 = vperm.xlu0 %3010, %v1913_v15   ;;  %v1923_v24 = vmul.f32 %v3057_v6, %v3665_v46  ;;  %v3059_v7 = vpop.eup %3058 }
 0x86b   : > { %v1925_v9 = vmul.f32 %v3059_v7, %v3663_v30 }
 0x86e   : > { %1941 = vperm.xlu0 %3010, %v1915_v12  }
 0x872   : > { %1944 = vperm.xlu0 %3010, %v1917_v17  }
 0x876   : > { %1947 = vperm.xlu0 %3010, %v1919_v4  }
 0x87a   : > { %1950 = vperm.xlu0 %3010, %v1921_v26  }
 0x87e   : > { %1953 = vperm.xlu0 %3010, %v1923_v24  }
 0x882   : > { %1956 = vperm.xlu0 %3010, %v1925_v9  }
 0x8e5   : > { %v1936_v29 = vpop.permute.xlu0 %1935 }
 0x8e6   : > { %v1961_v44 = vrot.slane %v1936_v29, %v3631_v45 }
 0x8e9   : > { %v1939_v11 = vpop.permute.xlu0 %1938 }
 0x8ea   : > { %v1965_v22 = vrot.slane %v1939_v11, %v3631_v45 }
 0x8ec   : > { %v1990_v30 = vsel %vm1710_vm1, %v1965_v22, %v1961_v44 }
 0x8ed   : > { %v1942_v19 = vpop.permute.xlu0 %1941 }
 0x8ee   : > { %v1969_v23 = vrot.slane %v1942_v19, %v3631_v45 }
 0x8f0   : > { %v1991_v31 = vsel %vm1712_vm2, %v1969_v23, %v1990_v30 }
 0x8f1   : > { %v1945_v20 = vpop.permute.xlu0 %1944 }
 0x8f2   : > { %v1973_v25 = vrot.slane %v1945_v20, %v3631_v45 }
 0x8f4   : > { %v1992_v43 = vsel %vm1714_vm3, %v1973_v25, %v1991_v31 }
 0x8f5   : > { %v1948_v16 = vpop.permute.xlu0 %1947 }
 0x8f6   : > { %v1977_v27 = vrot.slane %v1948_v16, %v3631_v45 }
 0x8f8   : > { %v1993_v33 = vsel %vm1716_vm4, %v1977_v27, %v1992_v43 }
 0x8f9   : > { %v1951_v21 = vpop.permute.xlu0 %1950 }
 0x8fa   : > { %v1981_v46 = vrot.slane %v1951_v21, %v3631_v45 }
 0x8fc   : > { %v1994_v34 = vsel %vm1718_vm5, %v1981_v46, %v1993_v33 }
 0x8fd   : > { %v1954_v28 = vpop.permute.xlu0 %1953 }
 0x8fe   : > { %v1985_v32 = vrot.slane %v1954_v28, %v3631_v45 }
 0x900   : > { %v1995_v35 = vsel %vm1720_vm6, %v1985_v32, %v1994_v34 }
 0x901   : > { %v1957_v63 = vpop.permute.xlu0 %1956 }
 0x902   : > { %v1989_v47 = vrot.slane %v1957_v63, %v3631_v45 }
 0x904   : > { %v1996_v14 = vsel %vm1722_vm7, %v1989_v47, %v1995_v35 }
 0x905   : > { %1998 = vst.msk [vmem:[%s384_s27] sm:$0xff] %vm1725_vm8, %v1996_v14 }
 0x906 PF: > { %p21_p12 = scmp.ge.s32.totalorder %s3371_s20, 4   ;;  %s3764_s24 = smov %s3214_s25 }
 0x907   : > { %s3765_s25 = smov %s3218_s26  ;;  %s3766_s26 = smov %s3382_s8 }
 0x908   : > { %s3767_s27 = smov %s3371_s20  ;;  %23 = sbr.rel (!%p21_p12) target bundleno = 10 (0xa), region = 118 }
 0x90f   :  { %2018 = vsyncpa [#allocation3], 1 }
 0x910   :  { %2020 = vsyncpa [#allocation3 + $0x1], 1 }
 0x911   :  { %2021 = vsyncpa [#allocation5], 1 }
 0x912   :  { %2023 = vsyncpa [#allocation5 + $0x1], 1 }
 0x913   :  { %2024 = vsyncpa [#allocation8], 1 }

</bundles_post_ra>
